<compile_context>
chip_gen: v6e
topology: v6e:2x2x1
jax: 0.10.0
libtpu: 0.0.40
codegen_flags: <defaults>
</compile_context>

<pallas_src>
import functools
import math

import jax
import jax.numpy as jnp
from jax import lax
from jax.experimental import pallas as pl
from jax.experimental.pallas import tpu as pltpu


def transformer_layer_kernel(
    x_ref,                      # (BB, L, Cp) f32 input block
    wq_ref, wk_ref, wv_ref,     # (Cp, Cp)   folded (pre-proj @ in-proj) weights, (in, out)
    bq_ref, bk_ref, bv_ref,     # (1, Cp)    in-proj biases (q bias pre-scaled by 1/sqrt(Dh))
    wo_ref, bo_ref,             # (Cp, Cp), (1, Cp)  MHA out-projection
    w12_ref,                    # (Cp, Cp)   folded fc1 @ fc2
    o_ref,                      # (BB, L, Cp)
    attn_ref,                   # (BB*L, Cp) f32 VMEM scratch (per-head outputs)
    *, num_heads, c_real, seq_len, block_batch,
):
    f32 = jnp.float32
    bf16 = jnp.bfloat16
    BB, L = block_batch, seq_len
    Cp = x_ref.shape[-1]
    H = num_heads
    Dh = c_real // H

    x = x_ref[...].reshape(BB * L, Cp)                           # f32, residual path
    xb = x.astype(bf16)

    # Folded q/k/v projections: bf16 MXU operands, f32 accumulate, f32 bias add.
    q = jnp.dot(xb, wq_ref[...].astype(bf16), preferred_element_type=f32) + bq_ref[...]
    k = jnp.dot(xb, wk_ref[...].astype(bf16), preferred_element_type=f32) + bk_ref[...]
    v = jnp.dot(xb, wv_ref[...].astype(bf16), preferred_element_type=f32) + bv_ref[...]

    # Padded lanes (>= c_real) must be zero before the out-projection reads the
    # scratch; the head loop below only writes lanes [0, c_real).
    attn_ref[...] = jnp.zeros_like(attn_ref)

    # Per-(batch, head) scaled-dot-product attention; statically unrolled so
    # every op is a 2-D MXU matmul / lane reduction.  The 1/sqrt(Dh) scale is
    # already folded into Wq/bq.
    # NOTE: for large L, tile over the K/V axis with an online softmax instead
    # of materializing the full (L, L) score matrix.
    for b in range(BB):
        r0 = b * L
        for h in range(H):
            lo = h * Dh
            qh = q[r0:r0 + L, lo:lo + Dh].astype(bf16)
            kh = k[r0:r0 + L, lo:lo + Dh].astype(bf16)
            vh = v[r0:r0 + L, lo:lo + Dh].astype(bf16)
            s = lax.dot_general(qh, kh, (((1,), (1,)), ((), ())),
                                preferred_element_type=f32)      # (L, L) f32
            s = s - jnp.max(s, axis=-1, keepdims=True)
            p = jnp.exp(s)
            p = p * pl.reciprocal(jnp.sum(p, axis=-1, keepdims=True), approx=True)
            attn_ref[r0:r0 + L, lo:lo + Dh] = jnp.dot(
                p.astype(bf16), vh, preferred_element_type=f32)

    # MHA out-projection + first residual (f32).
    attn = jnp.dot(attn_ref[...].astype(bf16), wo_ref[...].astype(bf16),
                   preferred_element_type=f32) + bo_ref[...]
    x1 = attn + x

    # fc2(fc1(x)) + x  -- no nonlinearity in the module, folded to one matmul.
    y = jnp.dot(x1.astype(bf16), w12_ref[...].astype(bf16),
                preferred_element_type=f32) + x1

    o_ref[...] = y.reshape(BB, L, Cp).astype(o_ref.dtype)


def _pick_block_batch(n, seq_len, target_rows=256):
    """Largest divisor of n packing <= target_rows tokens while keeping >= 2 grid steps."""
    best = 1
    for cand in range(1, n + 1):
        if n % cand == 0 and cand * seq_len <= target_rows and n // cand >= 2:
            best = cand
    return best


def transformer_layer(x_lnc, params, num_heads):
    """x_lnc: (L, N, C) f32, seq-first like nn.MultiheadAttention's default.

    params (PyTorch layouts):
      wq, wk, wv : (C, C)    q/k/v Linear weights (out, in), bias=False
      in_w, in_b : (3C, C), (3C,)  MHA in_proj_weight / in_proj_bias
      wo, bo     : (C, C), (C,)    MHA out_proj weight / bias
      w1, w2     : (C, C)    fc1 / fc2 weights (out, in), bias=False
    """
    L, N, C = x_lnc.shape
    assert C % num_heads == 0
    f32 = jnp.float32
    hi = lax.Precision.HIGHEST

    # --- algebraic weight folding (once, in f32 at full precision) ---
    wqi, wki, wvi = jnp.split(params["in_w"], 3, axis=0)
    bqi, bki, bvi = jnp.split(params["in_b"], 3, axis=0)
    scale = 1.0 / math.sqrt(C // num_heads)
    Wq = jnp.matmul(params["wq"].T, wqi.T, precision=hi) * scale
    Wk = jnp.matmul(params["wk"].T, wki.T, precision=hi)
    Wv = jnp.matmul(params["wv"].T, wvi.T, precision=hi)
    bq = (bqi * scale).reshape(1, C)
    bk = bki.reshape(1, C)
    bv = bvi.reshape(1, C)
    Wo = params["wo"].T
    bo = params["bo"].reshape(1, C)
    W12 = jnp.matmul(params["w1"].T, params["w2"].T, precision=hi)

    # --- lane-dense channel padding (zeros; padded lanes stay zero end-to-end) ---
    Cp = ((C + 127) // 128) * 128

    def pad_mat(a):
        if a.shape == (Cp, Cp):
            return a.astype(f32)
        return jnp.zeros((Cp, Cp), f32).at[:a.shape[0], :a.shape[1]].set(a.astype(f32))

    def pad_vec(a):
        if a.shape == (1, Cp):
            return a.astype(f32)
        return jnp.zeros((1, Cp), f32).at[:, :a.shape[1]].set(a.astype(f32))

    Wq_p, Wk_p, Wv_p = pad_mat(Wq), pad_mat(Wk), pad_mat(Wv)
    Wo_p, W12_p = pad_mat(Wo), pad_mat(W12)
    bq_p, bk_p, bv_p, bo_p = pad_vec(bq), pad_vec(bk), pad_vec(bv), pad_vec(bo)

    x_nlc = jnp.transpose(x_lnc, (1, 0, 2)).astype(f32)              # (N, L, C)
    if Cp != C:
        x_pad = jnp.zeros((N, L, Cp), f32).at[:, :, :C].set(x_nlc)
    else:
        x_pad = x_nlc

    # --- token packing / grid choice ---
    BB = _pick_block_batch(N, L)
    grid = (N // BB,)

    kernel = functools.partial(
        transformer_layer_kernel,
        num_heads=num_heads, c_real=C, seq_len=L, block_batch=BB)

    # Explicit VMEM budget: single-buffered weights + double-buffered activation
    # blocks + attention scratch, with headroom.
    w_bytes = (5 * Cp * Cp + 4 * Cp) * 4
    act_bytes = 2 * 2 * BB * L * Cp * 4
    scratch_bytes = BB * L * Cp * 4
    vmem_limit = int(max(32 * 2**20,
                         min(2 * (w_bytes + act_bytes + scratch_bytes), 100 * 2**20)))

    def run(single_buffer_weights):
        wkw = {"pipeline_mode": pl.Buffered(1)} if single_buffer_weights else {}
        x_spec = pl.BlockSpec((BB, L, Cp), lambda i: (i, 0, 0))
        w_spec = pl.BlockSpec((Cp, Cp), lambda i: (0, 0), **wkw)
        b_spec = pl.BlockSpec((1, Cp), lambda i: (0, 0), **wkw)
        out = pl.pallas_call(
            kernel,
            out_shape=jax.ShapeDtypeStruct((N, L, Cp), f32),
            grid_spec=pltpu.PrefetchScalarGridSpec(
                num_scalar_prefetch=0,
                grid=grid,
                in_specs=[x_spec,
                          w_spec, w_spec, w_spec,      # Wq, Wk, Wv (folded)
                          b_spec, b_spec, b_spec,      # bq, bk, bv
                          w_spec, b_spec,              # Wo, bo
                          w_spec],                     # W12 (folded MLP)
                out_specs=x_spec,
                scratch_shapes=[pltpu.VMEM((BB * L, Cp), jnp.float32)]),
            compiler_params=pltpu.CompilerParams(
                dimension_semantics=("parallel",),
                vmem_limit_bytes=vmem_limit),
        )(x_pad, Wq_p, Wk_p, Wv_p, bq_p, bk_p, bv_p, Wo_p, bo_p, W12_p)
        return jax.block_until_ready(out)

    try:
        out_pad = run(single_buffer_weights=True)
    except Exception:
        # Portability guard: if this Pallas build rejects Buffered(1), fall back
        # to default (double) buffering for the resident weights.
        out_pad = run(single_buffer_weights=False)

    out_nlc = out_pad[:, :, :C]
    return jnp.transpose(out_nlc, (1, 0, 2))                         # (L, N, C)


def transformer_layer_ref(x, p, num_heads):
    """Plain-JAX reference matching the PyTorch TransformerLayer forward."""
    L, N, C = x.shape
    H = num_heads
    Dh = C // H

    q1 = x @ p["wq"].T
    k1 = x @ p["wk"].T
    v1 = x @ p["wv"].T

    wqi, wki, wvi = jnp.split(p["in_w"], 3, axis=0)
    bqi, bki, bvi = jnp.split(p["in_b"], 3, axis=0)
    q2 = q1 @ wqi.T + bqi
    k2 = k1 @ wki.T + bki
    v2 = v1 @ wvi.T + bvi

    def heads(t):  # (L, N, C) -> (N, H, L, Dh)
        return t.reshape(L, N, H, Dh).transpose(1, 2, 0, 3)

    qh, kh, vh = heads(q2), heads(k2), heads(v2)
    s = (qh @ jnp.swapaxes(kh, -1, -2)) * (1.0 / math.sqrt(Dh))      # (N,H,L,L)
    a = jax.nn.softmax(s, axis=-1)
    o = a @ vh                                                       # (N,H,L,Dh)
    o = o.transpose(2, 0, 1, 3).reshape(L, N, C)
    attn = o @ p["wo"].T + p["bo"]

    x = attn + x
    x = (x @ p["w1"].T) @ p["w2"].T + x
    return x


if __name__ == "__main__":
    key = jax.random.PRNGKey(0)
    L, N, C, H = 8, 2, 32, 4                 # seq, batch, channels, heads
    ks = jax.random.split(key, 10)
    s = 1.0 / math.sqrt(C)

    x = jax.random.normal(ks[0], (L, N, C), dtype=jnp.float32)
    params = dict(
        wq=jax.random.normal(ks[1], (C, C), dtype=jnp.float32) * s,
        wk=jax.random.normal(ks[2], (C, C), dtype=jnp.float32) * s,
        wv=jax.random.normal(ks[3], (C, C), dtype=jnp.float32) * s,
        in_w=jax.random.normal(ks[4], (3 * C, C), dtype=jnp.float32) * s,
        in_b=jax.random.normal(ks[5], (3 * C,), dtype=jnp.float32) * 0.1,
        wo=jax.random.normal(ks[6], (C, C), dtype=jnp.float32) * s,
        bo=jax.random.normal(ks[7], (C,), dtype=jnp.float32) * 0.1,
        w1=jax.random.normal(ks[8], (C, C), dtype=jnp.float32) * s,
        w2=jax.random.normal(ks[9], (C, C), dtype=jnp.float32) * s,
    )

    out = transformer_layer(x, params, H)
    out = jax.block_until_ready(out)

    with jax.default_matmul_precision("highest"):     # local, not process-global
        ref = transformer_layer_ref(x, params, H)
    ref = jax.block_until_ready(ref)

    assert out.shape == (L, N, C)
    max_err = float(jnp.max(jnp.abs(out - ref)))
    # bf16 MXU operands (f32 accumulate) + approx softmax reciprocal -> relaxed tol.
    assert jnp.allclose(out, ref, atol=1e-1, rtol=1e-2), f"mismatch: {max_err}"

    print("KERNEL_OK")
</pallas_src>

<mosaic_0001>
module attributes {stable_mosaic.version = 11 : i64} {
  func.func @transformer_layer_kernel(%arg0: i32, %arg1: memref<1x8x128xf32, #tpu.memory_space<vmem>>, %arg2: memref<128x128xf32, #tpu.memory_space<vmem>>, %arg3: memref<128x128xf32, #tpu.memory_space<vmem>>, %arg4: memref<128x128xf32, #tpu.memory_space<vmem>>, %arg5: memref<1x128xf32, #tpu.memory_space<vmem>>, %arg6: memref<1x128xf32, #tpu.memory_space<vmem>>, %arg7: memref<1x128xf32, #tpu.memory_space<vmem>>, %arg8: memref<128x128xf32, #tpu.memory_space<vmem>>, %arg9: memref<1x128xf32, #tpu.memory_space<vmem>>, %arg10: memref<128x128xf32, #tpu.memory_space<vmem>>, %arg11: memref<1x8x128xf32, #tpu.memory_space<vmem>>, %arg12: memref<8x128xf32, #tpu.memory_space<vmem>>) attributes {dimension_semantics = [#tpu.dimension_semantics<parallel>], iteration_bounds = array<i64: 2>, scalar_prefetch = 0 : i64, scratch_operands = 1 : i64, tpu.core_type = #tpu.core_type<tc>, window_params = [{transform_indices = @transform_0, window_bounds = array<i64: 1, 8, 128>}, {pipeline_mode = #tpu.pipeline_mode<synchronous>, transform_indices = @transform_1, window_bounds = array<i64: 128, 128>}, {pipeline_mode = #tpu.pipeline_mode<synchronous>, transform_indices = @transform_2, window_bounds = array<i64: 128, 128>}, {pipeline_mode = #tpu.pipeline_mode<synchronous>, transform_indices = @transform_3, window_bounds = array<i64: 128, 128>}, {pipeline_mode = #tpu.pipeline_mode<synchronous>, transform_indices = @transform_4, window_bounds = array<i64: 1, 128>}, {pipeline_mode = #tpu.pipeline_mode<synchronous>, transform_indices = @transform_5, window_bounds = array<i64: 1, 128>}, {pipeline_mode = #tpu.pipeline_mode<synchronous>, transform_indices = @transform_6, window_bounds = array<i64: 1, 128>}, {pipeline_mode = #tpu.pipeline_mode<synchronous>, transform_indices = @transform_7, window_bounds = array<i64: 128, 128>}, {pipeline_mode = #tpu.pipeline_mode<synchronous>, transform_indices = @transform_8, window_bounds = array<i64: 1, 128>}, {pipeline_mode = #tpu.pipeline_mode<synchronous>, transform_indices = @transform_9, window_bounds = array<i64: 128, 128>}, {transform_indices = @transform_10, window_bounds = array<i64: 1, 8, 128>}]} {
    %c0 = arith.constant 0 : index
    %c0_0 = arith.constant 0 : index
    %c0_1 = arith.constant 0 : index
    %0 = vector.load %arg1[%c0, %c0_0, %c0_1] : memref<1x8x128xf32, #tpu.memory_space<vmem>>, vector<1x8x128xf32>
    %1 = vector.shape_cast %0 : vector<1x8x128xf32> to vector<8x128xf32>
    %2 = arith.truncf %1 : vector<8x128xf32> to vector<8x128xbf16>
    %c0_2 = arith.constant 0 : index
    %c0_3 = arith.constant 0 : index
    %3 = vector.load %arg2[%c0_2, %c0_3] : memref<128x128xf32, #tpu.memory_space<vmem>>, vector<128x128xf32>
    %4 = arith.truncf %3 : vector<128x128xf32> to vector<128x128xbf16>
    %cst = arith.constant dense<0.000000e+00> : vector<8x128xf32>
    %5 = tpu.matmul %2, %4, %cst {dimension_numbers = #tpu.dot_dimension_numbers<[1], [0], [0], [1], [0, 0, 1, 1], [], []>} : vector<8x128xbf16>, vector<128x128xbf16>, vector<8x128xf32> -> vector<8x128xf32>
    %c0_4 = arith.constant 0 : index
    %c0_5 = arith.constant 0 : index
    %6 = vector.load %arg5[%c0_4, %c0_5] : memref<1x128xf32, #tpu.memory_space<vmem>>, vector<1x128xf32>
    %7 = vector.broadcast %6 : vector<1x128xf32> to vector<8x128xf32>
    %8 = arith.addf %5, %7 : vector<8x128xf32>
    %c0_6 = arith.constant 0 : index
    %c0_7 = arith.constant 0 : index
    %9 = vector.load %arg3[%c0_6, %c0_7] : memref<128x128xf32, #tpu.memory_space<vmem>>, vector<128x128xf32>
    %10 = arith.truncf %9 : vector<128x128xf32> to vector<128x128xbf16>
    %cst_8 = arith.constant dense<0.000000e+00> : vector<8x128xf32>
    %11 = tpu.matmul %2, %10, %cst_8 {dimension_numbers = #tpu.dot_dimension_numbers<[1], [0], [0], [1], [0, 0, 1, 1], [], []>} : vector<8x128xbf16>, vector<128x128xbf16>, vector<8x128xf32> -> vector<8x128xf32>
    %c0_9 = arith.constant 0 : index
    %c0_10 = arith.constant 0 : index
    %12 = vector.load %arg6[%c0_9, %c0_10] : memref<1x128xf32, #tpu.memory_space<vmem>>, vector<1x128xf32>
    %13 = vector.broadcast %12 : vector<1x128xf32> to vector<8x128xf32>
    %14 = arith.addf %11, %13 : vector<8x128xf32>
    %c0_11 = arith.constant 0 : index
    %c0_12 = arith.constant 0 : index
    %15 = vector.load %arg4[%c0_11, %c0_12] : memref<128x128xf32, #tpu.memory_space<vmem>>, vector<128x128xf32>
    %16 = arith.truncf %15 : vector<128x128xf32> to vector<128x128xbf16>
    %cst_13 = arith.constant dense<0.000000e+00> : vector<8x128xf32>
    %17 = tpu.matmul %2, %16, %cst_13 {dimension_numbers = #tpu.dot_dimension_numbers<[1], [0], [0], [1], [0, 0, 1, 1], [], []>} : vector<8x128xbf16>, vector<128x128xbf16>, vector<8x128xf32> -> vector<8x128xf32>
    %c0_14 = arith.constant 0 : index
    %c0_15 = arith.constant 0 : index
    %18 = vector.load %arg7[%c0_14, %c0_15] : memref<1x128xf32, #tpu.memory_space<vmem>>, vector<1x128xf32>
    %19 = vector.broadcast %18 : vector<1x128xf32> to vector<8x128xf32>
    %20 = arith.addf %17, %19 : vector<8x128xf32>
    %cst_16 = arith.constant 0.000000e+00 : f32
    %21 = vector.broadcast %cst_16 : f32 to vector<8x128xf32>
    %c0_17 = arith.constant 0 : index
    %c0_18 = arith.constant 0 : index
    %22 = vector.load %arg12[%c0_17, %c0_18] : memref<8x128xf32, #tpu.memory_space<vmem>>, vector<8x128xf32>
    tpu.vector_store %arg12[%c0_17, %c0_18], %21 {strides = array<i32>} : memref<8x128xf32, #tpu.memory_space<vmem>>, vector<8x128xf32>,
    %23 = vector.extract_strided_slice %8 {offsets = [0, 0], sizes = [8, 8], strides = [1, 1]} : vector<8x128xf32> to vector<8x8xf32>
    %24 = arith.truncf %23 : vector<8x8xf32> to vector<8x8xbf16>
    %25 = vector.extract_strided_slice %14 {offsets = [0, 0], sizes = [8, 8], strides = [1, 1]} : vector<8x128xf32> to vector<8x8xf32>
    %26 = arith.truncf %25 : vector<8x8xf32> to vector<8x8xbf16>
    %27 = vector.extract_strided_slice %20 {offsets = [0, 0], sizes = [8, 8], strides = [1, 1]} : vector<8x128xf32> to vector<8x8xf32>
    %28 = arith.truncf %27 : vector<8x8xf32> to vector<8x8xbf16>
    %cst_19 = arith.constant dense<0.000000e+00> : vector<8x8xf32>
    %29 = tpu.matmul %24, %26, %cst_19 {dimension_numbers = #tpu.dot_dimension_numbers<[1], [1], [0], [0], [0, 0, 1, 0], [], []>} : vector<8x8xbf16>, vector<8x8xbf16>, vector<8x8xf32> -> vector<8x8xf32>
    %cst_20 = arith.constant dense<0xFF800000> : vector<8xf32>
    %30 = vector.multi_reduction <maximumf>, %29, %cst_20 [1] : vector<8x8xf32> to vector<8xf32>
    %31 = vector.shape_cast %30 : vector<8xf32> to vector<8x1xf32>
    %32 = vector.broadcast %31 : vector<8x1xf32> to vector<8x8xf32>
    %33 = arith.subf %29, %32 : vector<8x8xf32>
    %34 = math.exp %33 : vector<8x8xf32>
    %cst_21 = arith.constant dense<0.000000e+00> : vector<8xf32>
    %35 = vector.multi_reduction <add>, %34, %cst_21 [1] : vector<8x8xf32> to vector<8xf32>
    %36 = vector.shape_cast %35 : vector<8xf32> to vector<8x1xf32>
    %37 = tpu.reciprocal %36 {approx = true} : vector<8x1xf32> -> vector<8x1xf32>
    %38 = vector.broadcast %37 : vector<8x1xf32> to vector<8x8xf32>
    %39 = arith.mulf %34, %38 : vector<8x8xf32>
    %40 = arith.truncf %39 : vector<8x8xf32> to vector<8x8xbf16>
    %cst_22 = arith.constant dense<0.000000e+00> : vector<8x8xf32>
    %41 = tpu.matmul %40, %28, %cst_22 {dimension_numbers = #tpu.dot_dimension_numbers<[1], [0], [0], [1], [0, 0, 1, 1], [], []>} : vector<8x8xbf16>, vector<8x8xbf16>, vector<8x8xf32> -> vector<8x8xf32>
    %c0_23 = arith.constant 0 : index
    %c0_24 = arith.constant 0 : index
    %42 = vector.load %arg12[%c0_23, %c0_24] : memref<8x128xf32, #tpu.memory_space<vmem>>, vector<8x8xf32>
    tpu.vector_store %arg12[%c0_23, %c0_24], %41 {strides = array<i32>} : memref<8x128xf32, #tpu.memory_space<vmem>>, vector<8x8xf32>,
    %43 = vector.extract_strided_slice %8 {offsets = [0, 8], sizes = [8, 8], strides = [1, 1]} : vector<8x128xf32> to vector<8x8xf32>
    %44 = arith.truncf %43 : vector<8x8xf32> to vector<8x8xbf16>
    %45 = vector.extract_strided_slice %14 {offsets = [0, 8], sizes = [8, 8], strides = [1, 1]} : vector<8x128xf32> to vector<8x8xf32>
    %46 = arith.truncf %45 : vector<8x8xf32> to vector<8x8xbf16>
    %47 = vector.extract_strided_slice %20 {offsets = [0, 8], sizes = [8, 8], strides = [1, 1]} : vector<8x128xf32> to vector<8x8xf32>
    %48 = arith.truncf %47 : vector<8x8xf32> to vector<8x8xbf16>
    %cst_25 = arith.constant dense<0.000000e+00> : vector<8x8xf32>
    %49 = tpu.matmul %44, %46, %cst_25 {dimension_numbers = #tpu.dot_dimension_numbers<[1], [1], [0], [0], [0, 0, 1, 0], [], []>} : vector<8x8xbf16>, vector<8x8xbf16>, vector<8x8xf32> -> vector<8x8xf32>
    %cst_26 = arith.constant dense<0xFF800000> : vector<8xf32>
    %50 = vector.multi_reduction <maximumf>, %49, %cst_26 [1] : vector<8x8xf32> to vector<8xf32>
    %51 = vector.shape_cast %50 : vector<8xf32> to vector<8x1xf32>
    %52 = vector.broadcast %51 : vector<8x1xf32> to vector<8x8xf32>
    %53 = arith.subf %49, %52 : vector<8x8xf32>
    %54 = math.exp %53 : vector<8x8xf32>
    %cst_27 = arith.constant dense<0.000000e+00> : vector<8xf32>
    %55 = vector.multi_reduction <add>, %54, %cst_27 [1] : vector<8x8xf32> to vector<8xf32>
    %56 = vector.shape_cast %55 : vector<8xf32> to vector<8x1xf32>
    %57 = tpu.reciprocal %56 {approx = true} : vector<8x1xf32> -> vector<8x1xf32>
    %58 = vector.broadcast %57 : vector<8x1xf32> to vector<8x8xf32>
    %59 = arith.mulf %54, %58 : vector<8x8xf32>
    %60 = arith.truncf %59 : vector<8x8xf32> to vector<8x8xbf16>
    %cst_28 = arith.constant dense<0.000000e+00> : vector<8x8xf32>
    %61 = tpu.matmul %60, %48, %cst_28 {dimension_numbers = #tpu.dot_dimension_numbers<[1], [0], [0], [1], [0, 0, 1, 1], [], []>} : vector<8x8xbf16>, vector<8x8xbf16>, vector<8x8xf32> -> vector<8x8xf32>
    %c0_29 = arith.constant 0 : index
    %c8 = arith.constant 8 : index
    %62 = vector.load %arg12[%c0_29, %c8] : memref<8x128xf32, #tpu.memory_space<vmem>>, vector<8x8xf32>
    tpu.vector_store %arg12[%c0_29, %c8], %61 {strides = array<i32>} : memref<8x128xf32, #tpu.memory_space<vmem>>, vector<8x8xf32>,
    %63 = vector.extract_strided_slice %8 {offsets = [0, 16], sizes = [8, 8], strides = [1, 1]} : vector<8x128xf32> to vector<8x8xf32>
    %64 = arith.truncf %63 : vector<8x8xf32> to vector<8x8xbf16>
    %65 = vector.extract_strided_slice %14 {offsets = [0, 16], sizes = [8, 8], strides = [1, 1]} : vector<8x128xf32> to vector<8x8xf32>
    %66 = arith.truncf %65 : vector<8x8xf32> to vector<8x8xbf16>
    %67 = vector.extract_strided_slice %20 {offsets = [0, 16], sizes = [8, 8], strides = [1, 1]} : vector<8x128xf32> to vector<8x8xf32>
    %68 = arith.truncf %67 : vector<8x8xf32> to vector<8x8xbf16>
    %cst_30 = arith.constant dense<0.000000e+00> : vector<8x8xf32>
    %69 = tpu.matmul %64, %66, %cst_30 {dimension_numbers = #tpu.dot_dimension_numbers<[1], [1], [0], [0], [0, 0, 1, 0], [], []>} : vector<8x8xbf16>, vector<8x8xbf16>, vector<8x8xf32> -> vector<8x8xf32>
    %cst_31 = arith.constant dense<0xFF800000> : vector<8xf32>
    %70 = vector.multi_reduction <maximumf>, %69, %cst_31 [1] : vector<8x8xf32> to vector<8xf32>
    %71 = vector.shape_cast %70 : vector<8xf32> to vector<8x1xf32>
    %72 = vector.broadcast %71 : vector<8x1xf32> to vector<8x8xf32>
    %73 = arith.subf %69, %72 : vector<8x8xf32>
    %74 = math.exp %73 : vector<8x8xf32>
    %cst_32 = arith.constant dense<0.000000e+00> : vector<8xf32>
    %75 = vector.multi_reduction <add>, %74, %cst_32 [1] : vector<8x8xf32> to vector<8xf32>
    %76 = vector.shape_cast %75 : vector<8xf32> to vector<8x1xf32>
    %77 = tpu.reciprocal %76 {approx = true} : vector<8x1xf32> -> vector<8x1xf32>
    %78 = vector.broadcast %77 : vector<8x1xf32> to vector<8x8xf32>
    %79 = arith.mulf %74, %78 : vector<8x8xf32>
    %80 = arith.truncf %79 : vector<8x8xf32> to vector<8x8xbf16>
    %cst_33 = arith.constant dense<0.000000e+00> : vector<8x8xf32>
    %81 = tpu.matmul %80, %68, %cst_33 {dimension_numbers = #tpu.dot_dimension_numbers<[1], [0], [0], [1], [0, 0, 1, 1], [], []>} : vector<8x8xbf16>, vector<8x8xbf16>, vector<8x8xf32> -> vector<8x8xf32>
    %c0_34 = arith.constant 0 : index
    %c16 = arith.constant 16 : index
    %82 = vector.load %arg12[%c0_34, %c16] : memref<8x128xf32, #tpu.memory_space<vmem>>, vector<8x8xf32>
    tpu.vector_store %arg12[%c0_34, %c16], %81 {strides = array<i32>} : memref<8x128xf32, #tpu.memory_space<vmem>>, vector<8x8xf32>,
    %83 = vector.extract_strided_slice %8 {offsets = [0, 24], sizes = [8, 8], strides = [1, 1]} : vector<8x128xf32> to vector<8x8xf32>
    %84 = arith.truncf %83 : vector<8x8xf32> to vector<8x8xbf16>
    %85 = vector.extract_strided_slice %14 {offsets = [0, 24], sizes = [8, 8], strides = [1, 1]} : vector<8x128xf32> to vector<8x8xf32>
    %86 = arith.truncf %85 : vector<8x8xf32> to vector<8x8xbf16>
    %87 = vector.extract_strided_slice %20 {offsets = [0, 24], sizes = [8, 8], strides = [1, 1]} : vector<8x128xf32> to vector<8x8xf32>
    %88 = arith.truncf %87 : vector<8x8xf32> to vector<8x8xbf16>
    %cst_35 = arith.constant dense<0.000000e+00> : vector<8x8xf32>
    %89 = tpu.matmul %84, %86, %cst_35 {dimension_numbers = #tpu.dot_dimension_numbers<[1], [1], [0], [0], [0, 0, 1, 0], [], []>} : vector<8x8xbf16>, vector<8x8xbf16>, vector<8x8xf32> -> vector<8x8xf32>
    %cst_36 = arith.constant dense<0xFF800000> : vector<8xf32>
    %90 = vector.multi_reduction <maximumf>, %89, %cst_36 [1] : vector<8x8xf32> to vector<8xf32>
    %91 = vector.shape_cast %90 : vector<8xf32> to vector<8x1xf32>
    %92 = vector.broadcast %91 : vector<8x1xf32> to vector<8x8xf32>
    %93 = arith.subf %89, %92 : vector<8x8xf32>
    %94 = math.exp %93 : vector<8x8xf32>
    %cst_37 = arith.constant dense<0.000000e+00> : vector<8xf32>
    %95 = vector.multi_reduction <add>, %94, %cst_37 [1] : vector<8x8xf32> to vector<8xf32>
    %96 = vector.shape_cast %95 : vector<8xf32> to vector<8x1xf32>
    %97 = tpu.reciprocal %96 {approx = true} : vector<8x1xf32> -> vector<8x1xf32>
    %98 = vector.broadcast %97 : vector<8x1xf32> to vector<8x8xf32>
    %99 = arith.mulf %94, %98 : vector<8x8xf32>
    %100 = arith.truncf %99 : vector<8x8xf32> to vector<8x8xbf16>
    %cst_38 = arith.constant dense<0.000000e+00> : vector<8x8xf32>
    %101 = tpu.matmul %100, %88, %cst_38 {dimension_numbers = #tpu.dot_dimension_numbers<[1], [0], [0], [1], [0, 0, 1, 1], [], []>} : vector<8x8xbf16>, vector<8x8xbf16>, vector<8x8xf32> -> vector<8x8xf32>
    %c0_39 = arith.constant 0 : index
    %c24 = arith.constant 24 : index
    %102 = vector.load %arg12[%c0_39, %c24] : memref<8x128xf32, #tpu.memory_space<vmem>>, vector<8x8xf32>
    tpu.vector_store %arg12[%c0_39, %c24], %101 {strides = array<i32>} : memref<8x128xf32, #tpu.memory_space<vmem>>, vector<8x8xf32>,
    %c0_40 = arith.constant 0 : index
    %c0_41 = arith.constant 0 : index
    %103 = vector.load %arg12[%c0_40, %c0_41] : memref<8x128xf32, #tpu.memory_space<vmem>>, vector<8x128xf32>
    %104 = arith.truncf %103 : vector<8x128xf32> to vector<8x128xbf16>
    %c0_42 = arith.constant 0 : index
    %c0_43 = arith.constant 0 : index
    %105 = vector.load %arg8[%c0_42, %c0_43] : memref<128x128xf32, #tpu.memory_space<vmem>>, vector<128x128xf32>
    %106 = arith.truncf %105 : vector<128x128xf32> to vector<128x128xbf16>
    %cst_44 = arith.constant dense<0.000000e+00> : vector<8x128xf32>
    %107 = tpu.matmul %104, %106, %cst_44 {dimension_numbers = #tpu.dot_dimension_numbers<[1], [0], [0], [1], [0, 0, 1, 1], [], []>} : vector<8x128xbf16>, vector<128x128xbf16>, vector<8x128xf32> -> vector<8x128xf32>
    %c0_45 = arith.constant 0 : index
    %c0_46 = arith.constant 0 : index
    %108 = vector.load %arg9[%c0_45, %c0_46] : memref<1x128xf32, #tpu.memory_space<vmem>>, vector<1x128xf32>
    %109 = vector.broadcast %108 : vector<1x128xf32> to vector<8x128xf32>
    %110 = arith.addf %107, %109 : vector<8x128xf32>
    %111 = arith.addf %110, %1 : vector<8x128xf32>
    %112 = arith.truncf %111 : vector<8x128xf32> to vector<8x128xbf16>
    %c0_47 = arith.constant 0 : index
    %c0_48 = arith.constant 0 : index
    %113 = vector.load %arg10[%c0_47, %c0_48] : memref<128x128xf32, #tpu.memory_space<vmem>>, vector<128x128xf32>
    %114 = arith.truncf %113 : vector<128x128xf32> to vector<128x128xbf16>
    %cst_49 = arith.constant dense<0.000000e+00> : vector<8x128xf32>
    %115 = tpu.matmul %112, %114, %cst_49 {dimension_numbers = #tpu.dot_dimension_numbers<[1], [0], [0], [1], [0, 0, 1, 1], [], []>} : vector<8x128xbf16>, vector<128x128xbf16>, vector<8x128xf32> -> vector<8x128xf32>
    %116 = arith.addf %115, %111 : vector<8x128xf32>
    %117 = vector.shape_cast %116 : vector<8x128xf32> to vector<1x8x128xf32>
    %c0_50 = arith.constant 0 : index
    %c0_51 = arith.constant 0 : index
    %c0_52 = arith.constant 0 : index
    %118 = vector.load %arg11[%c0_50, %c0_51, %c0_52] : memref<1x8x128xf32, #tpu.memory_space<vmem>>, vector<1x8x128xf32>
    tpu.vector_store %arg11[%c0_50, %c0_51, %c0_52], %117 {strides = array<i32>} : memref<1x8x128xf32, #tpu.memory_space<vmem>>, vector<1x8x128xf32>,
    return
  }
  func.func @transform_0(%arg0: i32) -> (i32, i32, i32) {
    %c0_i32 = arith.constant 0 : i32
    %c0_i32_0 = arith.constant 0 : i32
    %c0_i32_1 = arith.constant 0 : i32
    return %arg0, %c0_i32, %c0_i32_0 : i32, i32, i32
  }
  func.func @transform_1(%arg0: i32) -> (i32, i32) {
    %c0_i32 = arith.constant 0 : i32
    %c0_i32_0 = arith.constant 0 : i32
    %c0_i32_1 = arith.constant 0 : i32
    return %c0_i32, %c0_i32_0 : i32, i32
  }
  func.func @transform_2(%arg0: i32) -> (i32, i32) {
    %c0_i32 = arith.constant 0 : i32
    %c0_i32_0 = arith.constant 0 : i32
    %c0_i32_1 = arith.constant 0 : i32
    return %c0_i32, %c0_i32_0 : i32, i32
  }
  func.func @transform_3(%arg0: i32) -> (i32, i32) {
    %c0_i32 = arith.constant 0 : i32
    %c0_i32_0 = arith.constant 0 : i32
    %c0_i32_1 = arith.constant 0 : i32
    return %c0_i32, %c0_i32_0 : i32, i32
  }
  func.func @transform_4(%arg0: i32) -> (i32, i32) {
    %c0_i32 = arith.constant 0 : i32
    %c0_i32_0 = arith.constant 0 : i32
    %c0_i32_1 = arith.constant 0 : i32
    return %c0_i32, %c0_i32_0 : i32, i32
  }
  func.func @transform_5(%arg0: i32) -> (i32, i32) {
    %c0_i32 = arith.constant 0 : i32
    %c0_i32_0 = arith.constant 0 : i32
    %c0_i32_1 = arith.constant 0 : i32
    return %c0_i32, %c0_i32_0 : i32, i32
  }
  func.func @transform_6(%arg0: i32) -> (i32, i32) {
    %c0_i32 = arith.constant 0 : i32
    %c0_i32_0 = arith.constant 0 : i32
    %c0_i32_1 = arith.constant 0 : i32
    return %c0_i32, %c0_i32_0 : i32, i32
  }
  func.func @transform_7(%arg0: i32) -> (i32, i32) {
    %c0_i32 = arith.constant 0 : i32
    %c0_i32_0 = arith.constant 0 : i32
    %c0_i32_1 = arith.constant 0 : i32
    return %c0_i32, %c0_i32_0 : i32, i32
  }
  func.func @transform_8(%arg0: i32) -> (i32, i32) {
    %c0_i32 = arith.constant 0 : i32
    %c0_i32_0 = arith.constant 0 : i32
    %c0_i32_1 = arith.constant 0 : i32
    return %c0_i32, %c0_i32_0 : i32, i32
  }
  func.func @transform_9(%arg0: i32) -> (i32, i32) {
    %c0_i32 = arith.constant 0 : i32
    %c0_i32_0 = arith.constant 0 : i32
    %c0_i32_1 = arith.constant 0 : i32
    return %c0_i32, %c0_i32_0 : i32, i32
  }
  func.func @transform_10(%arg0: i32) -> (i32, i32, i32) {
    %c0_i32 = arith.constant 0 : i32
    %c0_i32_0 = arith.constant 0 : i32
    %c0_i32_1 = arith.constant 0 : i32
    return %arg0, %c0_i32, %c0_i32_0 : i32, i32, i32
  }
}

module attributes {stable_mosaic.version = 11 : i64} {
  func.func @transformer_layer_kernel(%arg0: i32, %arg1: memref<1x8x128xf32, #tpu.memory_space<vmem>>, %arg2: memref<128x128xf32, #tpu.memory_space<vmem>>, %arg3: memref<128x128xf32, #tpu.memory_space<vmem>>, %arg4: memref<128x128xf32, #tpu.memory_space<vmem>>, %arg5: memref<1x128xf32, #tpu.memory_space<vmem>>, %arg6: memref<1x128xf32, #tpu.memory_space<vmem>>, %arg7: memref<1x128xf32, #tpu.memory_space<vmem>>, %arg8: memref<128x128xf32, #tpu.memory_space<vmem>>, %arg9: memref<1x128xf32, #tpu.memory_space<vmem>>, %arg10: memref<128x128xf32, #tpu.memory_space<vmem>>, %arg11: memref<1x8x128xf32, #tpu.memory_space<vmem>>, %arg12: memref<8x128xf32, #tpu.memory_space<vmem>>) attributes {dimension_semantics = [#tpu.dimension_semantics<parallel>], iteration_bounds = array<i64: 2>, scalar_prefetch = 0 : i64, scratch_operands = 1 : i64, tpu.core_type = #tpu.core_type<tc>, window_params = [{transform_indices = @transform_0, window_bounds = array<i64: 1, 8, 128>}, {pipeline_mode = #tpu.pipeline_mode<synchronous>, transform_indices = @transform_1, window_bounds = array<i64: 128, 128>}, {pipeline_mode = #tpu.pipeline_mode<synchronous>, transform_indices = @transform_2, window_bounds = array<i64: 128, 128>}, {pipeline_mode = #tpu.pipeline_mode<synchronous>, transform_indices = @transform_3, window_bounds = array<i64: 128, 128>}, {pipeline_mode = #tpu.pipeline_mode<synchronous>, transform_indices = @transform_4, window_bounds = array<i64: 1, 128>}, {pipeline_mode = #tpu.pipeline_mode<synchronous>, transform_indices = @transform_5, window_bounds = array<i64: 1, 128>}, {pipeline_mode = #tpu.pipeline_mode<synchronous>, transform_indices = @transform_6, window_bounds = array<i64: 1, 128>}, {pipeline_mode = #tpu.pipeline_mode<synchronous>, transform_indices = @transform_7, window_bounds = array<i64: 128, 128>}, {pipeline_mode = #tpu.pipeline_mode<synchronous>, transform_indices = @transform_8, window_bounds = array<i64: 1, 128>}, {pipeline_mode = #tpu.pipeline_mode<synchronous>, transform_indices = @transform_9, window_bounds = array<i64: 128, 128>}, {transform_indices = @transform_10, window_bounds = array<i64: 1, 8, 128>}]} {
    %c0 = arith.constant 0 : index
    %c0_0 = arith.constant 0 : index
    %c0_1 = arith.constant 0 : index
    %0 = vector.load %arg1[%c0, %c0_0, %c0_1] : memref<1x8x128xf32, #tpu.memory_space<vmem>>, vector<1x8x128xf32>
    %1 = vector.shape_cast %0 : vector<1x8x128xf32> to vector<8x128xf32>
    %2 = arith.truncf %1 : vector<8x128xf32> to vector<8x128xbf16>
    %c0_2 = arith.constant 0 : index
    %c0_3 = arith.constant 0 : index
    %3 = vector.load %arg2[%c0_2, %c0_3] : memref<128x128xf32, #tpu.memory_space<vmem>>, vector<128x128xf32>
    %4 = arith.truncf %3 : vector<128x128xf32> to vector<128x128xbf16>
    %cst = arith.constant dense<0.000000e+00> : vector<8x128xf32>
    %5 = tpu.matmul %2, %4, %cst {dimension_numbers = #tpu.dot_dimension_numbers<[1], [0], [0], [1], [0, 0, 1, 1], [], []>} : vector<8x128xbf16>, vector<128x128xbf16>, vector<8x128xf32> -> vector<8x128xf32>
    %c0_4 = arith.constant 0 : index
    %c0_5 = arith.constant 0 : index
    %6 = vector.load %arg5[%c0_4, %c0_5] : memref<1x128xf32, #tpu.memory_space<vmem>>, vector<1x128xf32>
    %7 = vector.broadcast %6 : vector<1x128xf32> to vector<8x128xf32>
    %8 = arith.addf %5, %7 : vector<8x128xf32>
    %c0_6 = arith.constant 0 : index
    %c0_7 = arith.constant 0 : index
    %9 = vector.load %arg3[%c0_6, %c0_7] : memref<128x128xf32, #tpu.memory_space<vmem>>, vector<128x128xf32>
    %10 = arith.truncf %9 : vector<128x128xf32> to vector<128x128xbf16>
    %cst_8 = arith.constant dense<0.000000e+00> : vector<8x128xf32>
    %11 = tpu.matmul %2, %10, %cst_8 {dimension_numbers = #tpu.dot_dimension_numbers<[1], [0], [0], [1], [0, 0, 1, 1], [], []>} : vector<8x128xbf16>, vector<128x128xbf16>, vector<8x128xf32> -> vector<8x128xf32>
    %c0_9 = arith.constant 0 : index
    %c0_10 = arith.constant 0 : index
    %12 = vector.load %arg6[%c0_9, %c0_10] : memref<1x128xf32, #tpu.memory_space<vmem>>, vector<1x128xf32>
    %13 = vector.broadcast %12 : vector<1x128xf32> to vector<8x128xf32>
    %14 = arith.addf %11, %13 : vector<8x128xf32>
    %c0_11 = arith.constant 0 : index
    %c0_12 = arith.constant 0 : index
    %15 = vector.load %arg4[%c0_11, %c0_12] : memref<128x128xf32, #tpu.memory_space<vmem>>, vector<128x128xf32>
    %16 = arith.truncf %15 : vector<128x128xf32> to vector<128x128xbf16>
    %cst_13 = arith.constant dense<0.000000e+00> : vector<8x128xf32>
    %17 = tpu.matmul %2, %16, %cst_13 {dimension_numbers = #tpu.dot_dimension_numbers<[1], [0], [0], [1], [0, 0, 1, 1], [], []>} : vector<8x128xbf16>, vector<128x128xbf16>, vector<8x128xf32> -> vector<8x128xf32>
    %c0_14 = arith.constant 0 : index
    %c0_15 = arith.constant 0 : index
    %18 = vector.load %arg7[%c0_14, %c0_15] : memref<1x128xf32, #tpu.memory_space<vmem>>, vector<1x128xf32>
    %19 = vector.broadcast %18 : vector<1x128xf32> to vector<8x128xf32>
    %20 = arith.addf %17, %19 : vector<8x128xf32>
    %cst_16 = arith.constant 0.000000e+00 : f32
    %21 = vector.broadcast %cst_16 : f32 to vector<8x128xf32>
    %c0_17 = arith.constant 0 : index
    %c0_18 = arith.constant 0 : index
    %22 = vector.load %arg12[%c0_17, %c0_18] : memref<8x128xf32, #tpu.memory_space<vmem>>, vector<8x128xf32>
    tpu.vector_store %arg12[%c0_17, %c0_18], %21 {strides = array<i32>} : memref<8x128xf32, #tpu.memory_space<vmem>>, vector<8x128xf32>,
    %23 = vector.extract_strided_slice %8 {offsets = [0, 0], sizes = [8, 8], strides = [1, 1]} : vector<8x128xf32> to vector<8x8xf32>
    %24 = arith.truncf %23 : vector<8x8xf32> to vector<8x8xbf16>
    %25 = vector.extract_strided_slice %14 {offsets = [0, 0], sizes = [8, 8], strides = [1, 1]} : vector<8x128xf32> to vector<8x8xf32>
    %26 = arith.truncf %25 : vector<8x8xf32> to vector<8x8xbf16>
    %27 = vector.extract_strided_slice %20 {offsets = [0, 0], sizes = [8, 8], strides = [1, 1]} : vector<8x128xf32> to vector<8x8xf32>
    %28 = arith.truncf %27 : vector<8x8xf32> to vector<8x8xbf16>
    %cst_19 = arith.constant dense<0.000000e+00> : vector<8x8xf32>
    %29 = tpu.matmul %24, %26, %cst_19 {dimension_numbers = #tpu.dot_dimension_numbers<[1], [1], [0], [0], [0, 0, 1, 0], [], []>} : vector<8x8xbf16>, vector<8x8xbf16>, vector<8x8xf32> -> vector<8x8xf32>
    %cst_20 = arith.constant dense<0xFF800000> : vector<8xf32>
    %30 = vector.multi_reduction <maximumf>, %29, %cst_20 [1] : vector<8x8xf32> to vector<8xf32>
    %31 = vector.shape_cast %30 : vector<8xf32> to vector<8x1xf32>
    %32 = vector.broadcast %31 : vector<8x1xf32> to vector<8x8xf32>
    %33 = arith.subf %29, %32 : vector<8x8xf32>
    %34 = math.exp %33 : vector<8x8xf32>
    %cst_21 = arith.constant dense<0.000000e+00> : vector<8xf32>
    %35 = vector.multi_reduction <add>, %34, %cst_21 [1] : vector<8x8xf32> to vector<8xf32>
    %36 = vector.shape_cast %35 : vector<8xf32> to vector<8x1xf32>
    %37 = tpu.reciprocal %36 {approx = true} : vector<8x1xf32> -> vector<8x1xf32>
    %38 = vector.broadcast %37 : vector<8x1xf32> to vector<8x8xf32>
    %39 = arith.mulf %34, %38 : vector<8x8xf32>
    %40 = arith.truncf %39 : vector<8x8xf32> to vector<8x8xbf16>
    %cst_22 = arith.constant dense<0.000000e+00> : vector<8x8xf32>
    %41 = tpu.matmul %40, %28, %cst_22 {dimension_numbers = #tpu.dot_dimension_numbers<[1], [0], [0], [1], [0, 0, 1, 1], [], []>} : vector<8x8xbf16>, vector<8x8xbf16>, vector<8x8xf32> -> vector<8x8xf32>
    %c0_23 = arith.constant 0 : index
    %c0_24 = arith.constant 0 : index
    %42 = vector.load %arg12[%c0_23, %c0_24] : memref<8x128xf32, #tpu.memory_space<vmem>>, vector<8x8xf32>
    tpu.vector_store %arg12[%c0_23, %c0_24], %41 {strides = array<i32>} : memref<8x128xf32, #tpu.memory_space<vmem>>, vector<8x8xf32>,
    %43 = vector.extract_strided_slice %8 {offsets = [0, 8], sizes = [8, 8], strides = [1, 1]} : vector<8x128xf32> to vector<8x8xf32>
    %44 = arith.truncf %43 : vector<8x8xf32> to vector<8x8xbf16>
    %45 = vector.extract_strided_slice %14 {offsets = [0, 8], sizes = [8, 8], strides = [1, 1]} : vector<8x128xf32> to vector<8x8xf32>
    %46 = arith.truncf %45 : vector<8x8xf32> to vector<8x8xbf16>
    %47 = vector.extract_strided_slice %20 {offsets = [0, 8], sizes = [8, 8], strides = [1, 1]} : vector<8x128xf32> to vector<8x8xf32>
    %48 = arith.truncf %47 : vector<8x8xf32> to vector<8x8xbf16>
    %cst_25 = arith.constant dense<0.000000e+00> : vector<8x8xf32>
    %49 = tpu.matmul %44, %46, %cst_25 {dimension_numbers = #tpu.dot_dimension_numbers<[1], [1], [0], [0], [0, 0, 1, 0], [], []>} : vector<8x8xbf16>, vector<8x8xbf16>, vector<8x8xf32> -> vector<8x8xf32>
    %cst_26 = arith.constant dense<0xFF800000> : vector<8xf32>
    %50 = vector.multi_reduction <maximumf>, %49, %cst_26 [1] : vector<8x8xf32> to vector<8xf32>
    %51 = vector.shape_cast %50 : vector<8xf32> to vector<8x1xf32>
    %52 = vector.broadcast %51 : vector<8x1xf32> to vector<8x8xf32>
    %53 = arith.subf %49, %52 : vector<8x8xf32>
    %54 = math.exp %53 : vector<8x8xf32>
    %cst_27 = arith.constant dense<0.000000e+00> : vector<8xf32>
    %55 = vector.multi_reduction <add>, %54, %cst_27 [1] : vector<8x8xf32> to vector<8xf32>
    %56 = vector.shape_cast %55 : vector<8xf32> to vector<8x1xf32>
    %57 = tpu.reciprocal %56 {approx = true} : vector<8x1xf32> -> vector<8x1xf32>
    %58 = vector.broadcast %57 : vector<8x1xf32> to vector<8x8xf32>
    %59 = arith.mulf %54, %58 : vector<8x8xf32>
    %60 = arith.truncf %59 : vector<8x8xf32> to vector<8x8xbf16>
    %cst_28 = arith.constant dense<0.000000e+00> : vector<8x8xf32>
    %61 = tpu.matmul %60, %48, %cst_28 {dimension_numbers = #tpu.dot_dimension_numbers<[1], [0], [0], [1], [0, 0, 1, 1], [], []>} : vector<8x8xbf16>, vector<8x8xbf16>, vector<8x8xf32> -> vector<8x8xf32>
    %c0_29 = arith.constant 0 : index
    %c8 = arith.constant 8 : index
    %62 = vector.load %arg12[%c0_29, %c8] : memref<8x128xf32, #tpu.memory_space<vmem>>, vector<8x8xf32>
    tpu.vector_store %arg12[%c0_29, %c8], %61 {strides = array<i32>} : memref<8x128xf32, #tpu.memory_space<vmem>>, vector<8x8xf32>,
    %63 = vector.extract_strided_slice %8 {offsets = [0, 16], sizes = [8, 8], strides = [1, 1]} : vector<8x128xf32> to vector<8x8xf32>
    %64 = arith.truncf %63 : vector<8x8xf32> to vector<8x8xbf16>
    %65 = vector.extract_strided_slice %14 {offsets = [0, 16], sizes = [8, 8], strides = [1, 1]} : vector<8x128xf32> to vector<8x8xf32>
    %66 = arith.truncf %65 : vector<8x8xf32> to vector<8x8xbf16>
    %67 = vector.extract_strided_slice %20 {offsets = [0, 16], sizes = [8, 8], strides = [1, 1]} : vector<8x128xf32> to vector<8x8xf32>
    %68 = arith.truncf %67 : vector<8x8xf32> to vector<8x8xbf16>
    %cst_30 = arith.constant dense<0.000000e+00> : vector<8x8xf32>
    %69 = tpu.matmul %64, %66, %cst_30 {dimension_numbers = #tpu.dot_dimension_numbers<[1], [1], [0], [0], [0, 0, 1, 0], [], []>} : vector<8x8xbf16>, vector<8x8xbf16>, vector<8x8xf32> -> vector<8x8xf32>
    %cst_31 = arith.constant dense<0xFF800000> : vector<8xf32>
    %70 = vector.multi_reduction <maximumf>, %69, %cst_31 [1] : vector<8x8xf32> to vector<8xf32>
    %71 = vector.shape_cast %70 : vector<8xf32> to vector<8x1xf32>
    %72 = vector.broadcast %71 : vector<8x1xf32> to vector<8x8xf32>
    %73 = arith.subf %69, %72 : vector<8x8xf32>
    %74 = math.exp %73 : vector<8x8xf32>
    %cst_32 = arith.constant dense<0.000000e+00> : vector<8xf32>
    %75 = vector.multi_reduction <add>, %74, %cst_32 [1] : vector<8x8xf32> to vector<8xf32>
    %76 = vector.shape_cast %75 : vector<8xf32> to vector<8x1xf32>
    %77 = tpu.reciprocal %76 {approx = true} : vector<8x1xf32> -> vector<8x1xf32>
    %78 = vector.broadcast %77 : vector<8x1xf32> to vector<8x8xf32>
    %79 = arith.mulf %74, %78 : vector<8x8xf32>
    %80 = arith.truncf %79 : vector<8x8xf32> to vector<8x8xbf16>
    %cst_33 = arith.constant dense<0.000000e+00> : vector<8x8xf32>
    %81 = tpu.matmul %80, %68, %cst_33 {dimension_numbers = #tpu.dot_dimension_numbers<[1], [0], [0], [1], [0, 0, 1, 1], [], []>} : vector<8x8xbf16>, vector<8x8xbf16>, vector<8x8xf32> -> vector<8x8xf32>
    %c0_34 = arith.constant 0 : index
    %c16 = arith.constant 16 : index
    %82 = vector.load %arg12[%c0_34, %c16] : memref<8x128xf32, #tpu.memory_space<vmem>>, vector<8x8xf32>
    tpu.vector_store %arg12[%c0_34, %c16], %81 {strides = array<i32>} : memref<8x128xf32, #tpu.memory_space<vmem>>, vector<8x8xf32>,
    %83 = vector.extract_strided_slice %8 {offsets = [0, 24], sizes = [8, 8], strides = [1, 1]} : vector<8x128xf32> to vector<8x8xf32>
    %84 = arith.truncf %83 : vector<8x8xf32> to vector<8x8xbf16>
    %85 = vector.extract_strided_slice %14 {offsets = [0, 24], sizes = [8, 8], strides = [1, 1]} : vector<8x128xf32> to vector<8x8xf32>
    %86 = arith.truncf %85 : vector<8x8xf32> to vector<8x8xbf16>
    %87 = vector.extract_strided_slice %20 {offsets = [0, 24], sizes = [8, 8], strides = [1, 1]} : vector<8x128xf32> to vector<8x8xf32>
    %88 = arith.truncf %87 : vector<8x8xf32> to vector<8x8xbf16>
    %cst_35 = arith.constant dense<0.000000e+00> : vector<8x8xf32>
    %89 = tpu.matmul %84, %86, %cst_35 {dimension_numbers = #tpu.dot_dimension_numbers<[1], [1], [0], [0], [0, 0, 1, 0], [], []>} : vector<8x8xbf16>, vector<8x8xbf16>, vector<8x8xf32> -> vector<8x8xf32>
    %cst_36 = arith.constant dense<0xFF800000> : vector<8xf32>
    %90 = vector.multi_reduction <maximumf>, %89, %cst_36 [1] : vector<8x8xf32> to vector<8xf32>
    %91 = vector.shape_cast %90 : vector<8xf32> to vector<8x1xf32>
    %92 = vector.broadcast %91 : vector<8x1xf32> to vector<8x8xf32>
    %93 = arith.subf %89, %92 : vector<8x8xf32>
    %94 = math.exp %93 : vector<8x8xf32>
    %cst_37 = arith.constant dense<0.000000e+00> : vector<8xf32>
    %95 = vector.multi_reduction <add>, %94, %cst_37 [1] : vector<8x8xf32> to vector<8xf32>
    %96 = vector.shape_cast %95 : vector<8xf32> to vector<8x1xf32>
    %97 = tpu.reciprocal %96 {approx = true} : vector<8x1xf32> -> vector<8x1xf32>
    %98 = vector.broadcast %97 : vector<8x1xf32> to vector<8x8xf32>
    %99 = arith.mulf %94, %98 : vector<8x8xf32>
    %100 = arith.truncf %99 : vector<8x8xf32> to vector<8x8xbf16>
    %cst_38 = arith.constant dense<0.000000e+00> : vector<8x8xf32>
    %101 = tpu.matmul %100, %88, %cst_38 {dimension_numbers = #tpu.dot_dimension_numbers<[1], [0], [0], [1], [0, 0, 1, 1], [], []>} : vector<8x8xbf16>, vector<8x8xbf16>, vector<8x8xf32> -> vector<8x8xf32>
    %c0_39 = arith.constant 0 : index
    %c24 = arith.constant 24 : index
    %102 = vector.load %arg12[%c0_39, %c24] : memref<8x128xf32, #tpu.memory_space<vmem>>, vector<8x8xf32>
    tpu.vector_store %arg12[%c0_39, %c24], %101 {strides = array<i32>} : memref<8x128xf32, #tpu.memory_space<vmem>>, vector<8x8xf32>,
    %c0_40 = arith.constant 0 : index
    %c0_41 = arith.constant 0 : index
    %103 = vector.load %arg12[%c0_40, %c0_41] : memref<8x128xf32, #tpu.memory_space<vmem>>, vector<8x128xf32>
    %104 = arith.truncf %103 : vector<8x128xf32> to vector<8x128xbf16>
    %c0_42 = arith.constant 0 : index
    %c0_43 = arith.constant 0 : index
    %105 = vector.load %arg8[%c0_42, %c0_43] : memref<128x128xf32, #tpu.memory_space<vmem>>, vector<128x128xf32>
    %106 = arith.truncf %105 : vector<128x128xf32> to vector<128x128xbf16>
    %cst_44 = arith.constant dense<0.000000e+00> : vector<8x128xf32>
    %107 = tpu.matmul %104, %106, %cst_44 {dimension_numbers = #tpu.dot_dimension_numbers<[1], [0], [0], [1], [0, 0, 1, 1], [], []>} : vector<8x128xbf16>, vector<128x128xbf16>, vector<8x128xf32> -> vector<8x128xf32>
    %c0_45 = arith.constant 0 : index
    %c0_46 = arith.constant 0 : index
    %108 = vector.load %arg9[%c0_45, %c0_46] : memref<1x128xf32, #tpu.memory_space<vmem>>, vector<1x128xf32>
    %109 = vector.broadcast %108 : vector<1x128xf32> to vector<8x128xf32>
    %110 = arith.addf %107, %109 : vector<8x128xf32>
    %111 = arith.addf %110, %1 : vector<8x128xf32>
    %112 = arith.truncf %111 : vector<8x128xf32> to vector<8x128xbf16>
    %c0_47 = arith.constant 0 : index
    %c0_48 = arith.constant 0 : index
    %113 = vector.load %arg10[%c0_47, %c0_48] : memref<128x128xf32, #tpu.memory_space<vmem>>, vector<128x128xf32>
    %114 = arith.truncf %113 : vector<128x128xf32> to vector<128x128xbf16>
    %cst_49 = arith.constant dense<0.000000e+00> : vector<8x128xf32>
    %115 = tpu.matmul %112, %114, %cst_49 {dimension_numbers = #tpu.dot_dimension_numbers<[1], [0], [0], [1], [0, 0, 1, 1], [], []>} : vector<8x128xbf16>, vector<128x128xbf16>, vector<8x128xf32> -> vector<8x128xf32>
    %116 = arith.addf %115, %111 : vector<8x128xf32>
    %117 = vector.shape_cast %116 : vector<8x128xf32> to vector<1x8x128xf32>
    %c0_50 = arith.constant 0 : index
    %c0_51 = arith.constant 0 : index
    %c0_52 = arith.constant 0 : index
    %118 = vector.load %arg11[%c0_50, %c0_51, %c0_52] : memref<1x8x128xf32, #tpu.memory_space<vmem>>, vector<1x8x128xf32>
    tpu.vector_store %arg11[%c0_50, %c0_51, %c0_52], %117 {strides = array<i32>} : memref<1x8x128xf32, #tpu.memory_space<vmem>>, vector<1x8x128xf32>,
    return
  }
  func.func @transform_0(%arg0: i32) -> (i32, i32, i32) {
    %c0_i32 = arith.constant 0 : i32
    %c0_i32_0 = arith.constant 0 : i32
    %c0_i32_1 = arith.constant 0 : i32
    return %arg0, %c0_i32, %c0_i32_0 : i32, i32, i32
  }
  func.func @transform_1(%arg0: i32) -> (i32, i32) {
    %c0_i32 = arith.constant 0 : i32
    %c0_i32_0 = arith.constant 0 : i32
    %c0_i32_1 = arith.constant 0 : i32
    return %c0_i32, %c0_i32_0 : i32, i32
  }
  func.func @transform_2(%arg0: i32) -> (i32, i32) {
    %c0_i32 = arith.constant 0 : i32
    %c0_i32_0 = arith.constant 0 : i32
    %c0_i32_1 = arith.constant 0 : i32
    return %c0_i32, %c0_i32_0 : i32, i32
  }
  func.func @transform_3(%arg0: i32) -> (i32, i32) {
    %c0_i32 = arith.constant 0 : i32
    %c0_i32_0 = arith.constant 0 : i32
    %c0_i32_1 = arith.constant 0 : i32
    return %c0_i32, %c0_i32_0 : i32, i32
  }
  func.func @transform_4(%arg0: i32) -> (i32, i32) {
    %c0_i32 = arith.constant 0 : i32
    %c0_i32_0 = arith.constant 0 : i32
    %c0_i32_1 = arith.constant 0 : i32
    return %c0_i32, %c0_i32_0 : i32, i32
  }
  func.func @transform_5(%arg0: i32) -> (i32, i32) {
    %c0_i32 = arith.constant 0 : i32
    %c0_i32_0 = arith.constant 0 : i32
    %c0_i32_1 = arith.constant 0 : i32
    return %c0_i32, %c0_i32_0 : i32, i32
  }
  func.func @transform_6(%arg0: i32) -> (i32, i32) {
    %c0_i32 = arith.constant 0 : i32
    %c0_i32_0 = arith.constant 0 : i32
    %c0_i32_1 = arith.constant 0 : i32
    return %c0_i32, %c0_i32_0 : i32, i32
  }
  func.func @transform_7(%arg0: i32) -> (i32, i32) {
    %c0_i32 = arith.constant 0 : i32
    %c0_i32_0 = arith.constant 0 : i32
    %c0_i32_1 = arith.constant 0 : i32
    return %c0_i32, %c0_i32_0 : i32, i32
  }
  func.func @transform_8(%arg0: i32) -> (i32, i32) {
    %c0_i32 = arith.constant 0 : i32
    %c0_i32_0 = arith.constant 0 : i32
    %c0_i32_1 = arith.constant 0 : i32
    return %c0_i32, %c0_i32_0 : i32, i32
  }
  func.func @transform_9(%arg0: i32) -> (i32, i32) {
    %c0_i32 = arith.constant 0 : i32
    %c0_i32_0 = arith.constant 0 : i32
    %c0_i32_1 = arith.constant 0 : i32
    return %c0_i32, %c0_i32_0 : i32, i32
  }
  func.func @transform_10(%arg0: i32) -> (i32, i32, i32) {
    %c0_i32 = arith.constant 0 : i32
    %c0_i32_0 = arith.constant 0 : i32
    %c0_i32_1 = arith.constant 0 : i32
    return %arg0, %c0_i32, %c0_i32_0 : i32, i32, i32
  }
}

</mosaic_0001>

<bundles_post_ra>
// kernel: tpu_custom_call.1
= control target key start
LH: loop header
LB: loop body
LE: loop exit
PB: predicated region body
PF: predicated region fallthrough
CT: control target
= control target key end

     0   :  { %s2457_s0 = inlined_call_operand.hbm [shape: f32[2,8,128], index: 0, kind: input, shape index: {}]   ;;  %s2458_s1 = inlined_call_operand.hbm [shape: f32[128,128], index: 1, kind: input, shape index: {}]   ;;  %s2459_s2 = inlined_call_operand.hbm [shape: f32[128,128], index: 2, kind: input, shape index: {}]   ;;  %s2460_s3 = inlined_call_operand.hbm [shape: f32[128,128], index: 3, kind: input, shape index: {}]   ;;  %s2461_s4 = inlined_call_operand.vmem [shape: f32[1,128], index: 4, kind: input, shape index: {}]   ;;  %s2462_s5 = inlined_call_operand.vmem [shape: f32[1,128], index: 5, kind: input, shape index: {}]   ;;  %s2463_s6 = inlined_call_operand.vmem [shape: f32[1,128], index: 6, kind: input, shape index: {}]   ;;  %s2464_s7 = inlined_call_operand.hbm [shape: f32[128,128], index: 7, kind: input, shape index: {}]   ;;  %s2465_s8 = inlined_call_operand.vmem [shape: f32[1,128], index: 8, kind: input, shape index: {}]   ;;  %s2466_s9 = inlined_call_operand.hbm [shape: f32[128,128], index: 9, kind: input, shape index: {}]   ;;  %s2467_s10 = inlined_call_operand.hbm [shape: f32[2,8,128], index: 10, kind: output, shape index: {}]  }
   0x1   :  { %2472 = sst [smem:[#allocation20_spill]] %s2458_s1 }
   0x2   :  { %2473 = sst [smem:[#allocation21_spill]] %s2459_s2 }
   0x3   :  { %2474 = sst [smem:[#allocation22_spill]] %s2460_s3 }
   0x4   :  { %2475 = sst [smem:[#allocation23_spill]] %s2464_s7 }
   0x5   :  { %2476 = sst [smem:[#allocation24_spill]] %s2466_s9 }
   0x6   :  { %15 = vsyncpa [#allocation4], 0 }
   0x7   :  { %17 = vsyncpa [#allocation4 + $0x1], 0 }
   0x8   :  { %18 = vsyncpa [#allocation7], 0 }
   0x9   :  { %19 = vsyncpa [#allocation10], 0 }
   0xa   :  { %20 = vsyncpa [#allocation13], 0 }
   0xb   :  { %21 = vsyncpa [#allocation5], 0 }
   0xc   :  { %23 = vsyncpa [#allocation5 + $0x1], 0  ;;  %s2072_s13 = smov 0   ;;  %s2074_s14 = smov 0  }
   0xd   :  { %s2076_s15 = smov 0   ;;  %s2078_s16 = smov 0  }
   0xe LB: > { %s2000_s17 = smov [#allocation6]   ;;  %s2093_s19 = sadd.s32 4294967295, %s1998_s16   ;;  %s1998_s16 = sphi %s2078_s16, %s2503_s16   ;;  %s1994_s15 = sphi %s2076_s15, %s2502_s15   ;;  %s1990_s14 = sphi %s2074_s14, %s2501_s14   ;;  %s1986_s13 = sphi %s2072_s13, %s2500_s13  }
   0xf   : > { %s287_s18 = sshll.u32 %s2000_s17, 4  ;;  %p1399_p0 = scmp.ge.s32.totalorder %s1998_s16, 1  ;;  %s288_s18 = int_to_ptr.vmem [resolvable:$true] %s287_s18 }
  0x10   : > { %p2468_p1 = scmp.eq.s32.totalorder %s2093_s19, 0  ;;  %p275_p2 = scmp.lt.s32.totalorder %s1998_s16, 3 }
  0x11   : > { %s2001_s21 = smov [#allocation9]   ;;  %s2002_s24 = smov [#allocation8]  }
  0x12   : > { %p2098_p3 = pnand %p1399_p0, %p275_p2  ;;  %s313_s22 = sshll.u32 %s2001_s21, 4  ;;  %s2111_s22 = int_to_ptr.vmem [resolvable:$true] %s313_s22 }
  0x13   : > { %s300_s25 = sshll.u32 %s2002_s24, 4  ;;  %s1775_s27 = scalar_lea.vmem %s288_s18, 2048  ;;  %s2113_s25 = int_to_ptr.vmem [resolvable:$true] %s300_s25 }
  0x14   : > { %s2477_s20 = scalar_select %p2098_p3, 1, 0 }
  0x15   : > { %p1665_p5 = pneg %p2098_p3  ;;  %p1776_p8 = scmp.ne.s32.totalorder %s288_s18, %s1775_s27 }
  0x16   : > { %p1783_p11 = scmp.lt.s32.totalorder %s288_s18, %s288_s18  ;;  %p1784_p12 = scmp.lt.s32.totalorder %s1775_s27, %s1775_s27 }
  0x17   : > { %p2107_p6 = pnand %p1665_p5, %p2468_p1 }
  0x18   : > { %p1785_p13 = por %p1784_p12, %p1783_p11 }
  0x19   : > { %p2117_p7 = pneg %p2107_p6 }
  0x1b   : > { %p1778_p9 = pnand %p1776_p8, %p2117_p7 }
  0x1d   : > { %p1779_p10 = pneg %p1778_p9 }
  0x1f   : > { %p1786_p0 = pnand %p1785_p13, %p1779_p10 }
  0x21   : > { %1789 = shalt.err (!%p1786_p0)
}
  0x22   : > { %s2003_s28 = smov 128   ;;  %s2004_s29 = smov 8  }
  0x23   : > { %s2480_s1 = sld [smem:[#allocation20_spill]]  ;;  %s1801_s12 = scalar_lea.vmem %s2111_s22, 2048 }
  0x24   : > { %p1802_p2 = scmp.ne.s32.totalorder %s2111_s22, %s1801_s12  ;;  %p1809_p9 = scmp.lt.s32.totalorder %s2111_s22, %s2111_s22 }
  0x25   : > { %p1810_p10 = scmp.lt.s32.totalorder %s1801_s12, %s1801_s12 }
  0x26   : > { %p1804_p5 = pnand %p1802_p2, %p2117_p7 }
  0x27   : > { %p1811_p11 = por %p1810_p10, %p1809_p9 }
  0x28   : > { %p1805_p8 = pneg %p1804_p5 }
  0x29   : > { %1668 = dma.hbm_to_vmem [thread:$0]  (!%p2107_p6), %s2480_s1, 2048, %s288_s18, [#allocation7], %s2003_s28, %s2003_s28, %s2004_s29  }
  0x2a   : > { %p1812_p12 = pnand %p1811_p11, %p1805_p8 }
  0x2c   : > { %1815 = shalt.err (!%p1812_p12)
}
  0x2d   : > { %s2481_s3 = sld [smem:[#allocation22_spill]]  ;;  %s1827_s18 = scalar_lea.vmem %s2113_s25, 2048 }
  0x2e   : > { %p1828_p13 = scmp.ne.s32.totalorder %s2113_s25, %s1827_s18  ;;  %p1835_p5 = scmp.lt.s32.totalorder %s2113_s25, %s2113_s25 }
  0x2f   : > { %p1836_p8 = scmp.lt.s32.totalorder %s1827_s18, %s1827_s18 }
  0x30   : > { %p1830_p0 = pnand %p1828_p13, %p2117_p7 }
  0x31   : > { %p1837_p9 = por %p1836_p8, %p1835_p5 }
  0x32   : > { %p1831_p2 = pneg %p1830_p0 }
  0x33   : > { %1674 = dma.hbm_to_vmem [thread:$0]  (!%p2107_p6), %s2481_s3, 2048, %s2111_s22, [#allocation10], %s2003_s28, %s2003_s28, %s2004_s29  }
  0x34   : > { %p1838_p10 = pnand %p1837_p9, %p1831_p2 }
  0x36   : > { %1841 = shalt.err (!%p1838_p10)
}
  0x37   : > { %s2482_s2 = sld [smem:[#allocation21_spill]]  ;;  %s2005_s22 = smov [#allocation11]  }
  0x38   : > { %s335_s30 = sshll.u32 %s2005_s22, 4  ;;  %s2006_s11 = smov [#allocation12]   ;;  %s336_s30 = int_to_ptr.vmem [resolvable:$true] %s335_s30 }
  0x39   : > { %s351_s12 = sshll.u32 %s2006_s11, 4  ;;  %s1853_s17 = scalar_lea.vmem %s336_s30, 2048  ;;  %s352_s12 = int_to_ptr.vmem [resolvable:$true] %s351_s12 }
  0x3a   : > { %p1854_p11 = scmp.ne.s32.totalorder %s336_s30, %s1853_s17  ;;  %p1861_p0 = scmp.lt.s32.totalorder %s336_s30, %s336_s30 }
  0x3b   : > { %p1862_p2 = scmp.lt.s32.totalorder %s1853_s17, %s1853_s17 }
  0x3c   : > { %p1856_p12 = pnand %p1854_p11, %p2117_p7 }
  0x3d   : > { %1671 = dma.hbm_to_vmem [thread:$0]  (!%p2107_p6), %s2482_s2, 2048, %s2113_s25, [#allocation7], %s2003_s28, %s2003_s28, %s2004_s29  }
  0x3e   : > { %p1857_p13 = pneg %p1856_p12  ;;  %p1863_p5 = por %p1862_p2, %p1861_p0 }
  0x40   : > { %p1864_p8 = pnand %p1863_p5, %p1857_p13 }
  0x42   : > { %1867 = shalt.err (!%p1864_p8)
}
  0x43   : > { %s2483_s7 = sld [smem:[#allocation23_spill]]  ;;  %s1879_s18 = scalar_lea.vmem %s352_s12, 2048 }
  0x44   : > { %p1880_p9 = scmp.ne.s32.totalorder %s352_s12, %s1879_s18  ;;  %p1887_p12 = scmp.lt.s32.totalorder %s352_s12, %s352_s12 }
  0x45   : > { %p1888_p0 = scmp.lt.s32.totalorder %s1879_s18, %s1879_s18 }
  0x46   : > { %p1882_p10 = pnand %p1880_p9, %p2117_p7 }
  0x47   : > { %p1889_p13 = por %p1888_p0, %p1887_p12 }
  0x48   : > { %p1883_p11 = pneg %p1882_p10 }
  0x49   : > { %1677 = dma.hbm_to_vmem [thread:$0]  (!%p2107_p6), %s2483_s7, 2048, %s336_s30, [#allocation10], %s2003_s28, %s2003_s28, %s2004_s29  }
  0x4a   : > { %p1890_p2 = pnand %p1889_p13, %p1883_p11 }
  0x4c   : > { %1893 = shalt.err (!%p1890_p2)
}
  0x4d   : > { %s2484_s9 = sld [smem:[#allocation24_spill]]  ;;  %s1398_s23 = sadd.s32 4294967294, %s1998_s16  }
  0x4e   : > { %s2183_s26 = sadd.s32 1, %s1998_s16   ;;  %s36_s22 = sadd.s32 1, %s1994_s15 }
  0x4f   : > { %s33_s30 = ssub.s32 %s1998_s16, %s2183_s26  ;;  %p43_p7 = scmp.ne.s32.totalorder %s1994_s15, %s1990_s14 }
  0x50   : > { %p34_p5 = scmp.eq.s32.totalorder %s33_s30, 0  ;;  %p44_p8 = scmp.eq.s32.totalorder %s1998_s16, 0 }
  0x51   : > { %p49_p9 = scmp.ne.s32.totalorder %s1990_s14, %s1986_s13  ;;  %p262_p10 = scmp.eq.s32.totalorder %s2093_s19, 1 }
  0x52   : > { %s2195_s11 = scalar_select %p34_p5, %s1994_s15, %s36_s22  }
  0x53   : > { %1680 = dma.hbm_to_vmem [thread:$0]  (!%p2107_p6), %s2484_s9, 2048, %s352_s12, [#allocation13], %s2003_s28, %s2003_s28, %s2004_s29  }
  0x54   : > { %p45_p11 = por %p44_p8, %p43_p7  ;;  %p2199_p12 = por %p2468_p1, %p49_p9 }
  0x55   : > { %p2203_p6 = por %p262_p10, %p43_p7  ;;  %p268_p0 = scmp.eq.s32.totalorder %s1398_s23, 1 }
  0x56   : > { %s2485_s17 = scalar_select %p2199_p12, 1, 0 }
  0x57   : > { %s2486_s28 = scalar_select %p2203_p6, 1, 0 }
  0x58   : > { %p1694_p13 = scmp.lt.s32.totalorder %s1998_s16, 2  ;;  %s365_s29 = sand.u32 1, %s1994_s15  }
  0x59   : > { %p2209_p2 = por %p268_p0, %p49_p9  ;;  %s1406_s25 = sshll.u32 %s365_s29, 3 }
  0x5a   : > { %s1407_s21 = sshll.u32 %s1998_s16, 7  ;;  %s369_s22 = scalar_lea.vmem [#allocation3], %s1406_s25 }
  0x5b   : > { %s2487_s12 = scalar_select %p2209_p2, 1, 0 }
  0x5c   : > { %s2217_s27 = scalar_lea.hbm %s2457_s0, %s1407_s21  ;;  %s376_s30 = sshll.u32 %s369_s22, 4  ;;  %s377_s30 = int_to_ptr.vmem [resolvable:$true] %s376_s30 }
  0x5d   : > { %p2219_p7 = pnand %p1694_p13, %p45_p11  ;;  %s366_s1 = scalar_lea.sflag [#allocation4], %s365_s29 }
  0x5e   : > { %s1894_s2 = scalar_lea.hbm %s2217_s27, 128  ;;  %s1899_s24 = scalar_lea.hbm %s2457_s0, 256 }
  0x5f   : > { %p1895_p5 = scmp.ne.s32.totalorder %s2217_s27, %s1894_s2  ;;  %p1896_p8 = pneg %p2219_p7 }
  0x60   : > { %p1900_p11 = scmp.lt.s32.totalorder %s2217_s27, %s2457_s0  ;;  %p1901_p0 = scmp.lt.s32.totalorder %s1899_s24, %s1894_s2 }
  0x61   : > { %p1897_p9 = pnand %p1896_p8, %p1895_p5 }
  0x62   : > { %p1902_p13 = por %p1901_p0, %p1900_p11 }
  0x63   : > { %p1898_p10 = pneg %p1897_p9 }
  0x65   : > { %p1903_p4 = pnand %p1902_p13, %p1898_p10 }
  0x67   : > { %1906 = shalt.err (!%p1903_p4)
}
  0x68   : > { %s1907_s22 = scalar_lea.vmem %s377_s30, 128  ;;  %s2007_s29 = smov [#allocation3]  }
  0x69   : > { %p1908_p1 = scmp.ne.s32.totalorder %s377_s30, %s1907_s22  ;;  %s1912_s7 = sshll.u32 %s2007_s29, 4  ;;  %s1913_s7 = int_to_ptr.vmem [resolvable:$false] %s1912_s7 }
  0x6a   : > { %s1914_s9 = scalar_lea.vmem %s1913_s7, 256  ;;  %p1915_p5 = scmp.lt.s32.totalorder %s377_s30, %s1913_s7 }
  0x6b   : > { %p1910_p2 = pnand %p1908_p1, %p1896_p8  ;;  %p1916_p9 = scmp.lt.s32.totalorder %s1914_s9, %s1907_s22 }
  0x6d   : > { %p1911_p6 = pneg %p1910_p2  ;;  %p1917_p12 = por %p1916_p9, %p1915_p5 }
  0x6f   : > { %p1918_p3 = pnand %p1917_p12, %p1911_p6 }
  0x71   : > { %1921 = shalt.err (!%p1918_p3)
}
  0x72   : > { %1684 = dma.hbm_to_vmem [thread:$0]  (!%p2219_p7), %s2217_s27, 128, %s377_s30, %s366_s1  }
  0x73   : > { %p2489_p10 = scmp.ne.s32.totalorder %s2477_s20, 0 }
  0x74   : > { %s2240_s2 = sand.u32 (!%p2489_p10), 1, %s1990_s14   ;;  %p2490_p1 = scmp.ne.s32.totalorder (!%p2489_p10), %s2485_s17, 0 }
  0x75   : > { %385 = sbr.rel (%p2489_p10) target bundleno = 2143 (0x85f), region = 60  ;;  %s1409_s3 = sshll.u32 (!%p2489_p10), %s2240_s2, 3 }
  0x76   : > { %s388_s7 = scalar_lea.sflag (!%p2489_p10), [#allocation4], %s2240_s2  ;;  %s2246_s9 = scalar_lea.vmem (!%p2489_p10), [#allocation3], %s1409_s3 }
  0x7a   : > { %1965 = dma.done.wait (%p2490_p1), %s388_s7, 128  }
  0x7b   : > { %1967 = vsyncadd (%p2490_p1), %s388_s7, 4294967168  ;;  %p2491_p3 = scmp.eq.s32.totalorder %s2093_s19, 0 }
  0x7d   : > { %1969 = dma.done.wait (%p2491_p3), [#allocation7], 4096   ;;  %p2492_p4 = pmov %p2491_p3 }
  0x7e   : > { %p2493_p12 = pmov %p2491_p3 }
  0x7f   : > { %1971 = vsyncadd (%p2492_p4), [#allocation7], 4294963200 }
  0x80   : > { %1973 = dma.done.wait (%p2493_p12), [#allocation10], 4096   ;;  %p2494_p6 = pmov %p2491_p3 }
  0x81   : > { %p2495_p2 = pmov %p2491_p3 }
  0x82   : > { %1975 = vsyncadd (%p2494_p6), [#allocation10], 4294963200 }
  0x83   : > { %1977 = dma.done.wait (%p2495_p2), [#allocation13], 2048   ;;  %p2496_p7 = pmov %p2495_p2 }
  0x84   : > { %v2008_v0 = vmov 0.0   ;;  %vm2009_vm0 = vmmov 0   ;;  %v536_v1 = vld [vmem:[#allocation8 + $0x70] sm:$0xff]  ;;  %v537_v2 = vld [vmem:[#allocation8 + $0x78] sm:$0xff]  ;;  %v534_v6 = vld [vmem:[#allocation8 + $0x60] sm:$0xff]  ;;  %vm668_vm1 = vcmask 64512  }
  0x85   : > { %1979 = vsyncadd (%p2496_p7), [#allocation13], 4294965248  ;;  %1513 = vmatprep.subr.bf16.mxu1 %v2008_v0  ;;  %664 = vst [vmem:[#allocation2] sm:$0xff] %v2008_v0  ;;  %1493 = vmatprep.subr.bf16.mxu0 %v2008_v0  ;;  %v465_v3 = vld [vmem:[#allocation6 + $0x70] sm:$0xff]  ;;  %v545_v4 = vpack.c.bf16 %v537_v2, %v536_v1  ;;  %v466_v5 = vld [vmem:[#allocation6 + $0x78] sm:$0xff]  ;;  %s2010_s30 = smov 120  }
  0x86   : > { %1529 = vmatprep.mubr.msk.bf16.mxu1 %vm2009_vm0, %v2008_v0  ;;  %1509 = vmatprep.mubr.msk.bf16.mxu0 %vm2009_vm0, %v2008_v0  ;;  %v535_v7 = vld [vmem:[#allocation8 + $0x68] sm:$0xff]  ;;  %v474_v8 = vpack.c.bf16 %v466_v5, %v465_v3  ;;  %v463_v9 = vld [vmem:[#allocation6 + $0x60] sm:$0xff]  ;;  %v532_v13 = vld [vmem:[#allocation8 + $0x50] sm:$0xff]  ;;  %s2011_s23 = smov 112   ;;  %s2012_s21 = smov 104   ;;  %vm730_vm2 = vcmask 1043456  }
  0x87   : > { %v464_v10 = vld [vmem:[#allocation6 + $0x68] sm:$0xff]  ;;  %1514 = vmatpush3.bf16.msra.mxu1 %v545_v4  ;;  %v544_v11 = vpack.c.bf16 %v535_v7, %v534_v6  ;;  %v533_v14 = vld [vmem:[#allocation8 + $0x58] sm:$0xff]  ;;  %v461_v15 = vld [vmem:[#allocation6 + $0x50] sm:$0xff]  ;;  %s2013_s25 = smov 8   ;;  %s2014_s22 = smov 16   ;;  %vm892_vm3 = vcmask 130112  }
  0x88   : > { %1494 = vmatpush3.bf16.msra.mxu0 %v474_v8  ;;  %1515 = vmatprep.subr.bf16.mxu1 %v2008_v0  ;;  %v473_v12 = vpack.c.bf16 %v464_v10, %v463_v9  ;;  %v462_v16 = vld [vmem:[#allocation6 + $0x58] sm:$0xff]  ;;  %v543_v17 = vpack.c.bf16 %v533_v14, %v532_v13  ;;  %v530_v19 = vld [vmem:[#allocation8 + $0x40] sm:$0xff]  ;;  %v531_v20 = vld [vmem:[#allocation8 + $0x48] sm:$0xff]  ;;  %s2015_s29 = smov 24   ;;  %vm1008_vm4 = vcmask 195712   ;;  %vm1124_vm5 = vcmask 261312  }
  0x89   : > { %1495 = vmatprep.subr.bf16.mxu0 %v2008_v0  ;;  %v472_v18 = vpack.c.bf16 %v462_v16, %v461_v15  ;;  %v459_v21 = vld [vmem:[#allocation6 + $0x40] sm:$0xff]  ;;  %v460_v22 = vld [vmem:[#allocation6 + $0x48] sm:$0xff]  ;;  %v542_v23 = vpack.c.bf16 %v531_v20, %v530_v19  ;;  %v528_v25 = vld [vmem:[#allocation8 + $0x30] sm:$0xff]  ;;  %s1429_s1 = sshll.u32 %s2093_s19, 7  ;;  %s447_s20 = scalar_lea.vmem [#allocation14], %s1409_s3 }
  0x8a   : > { %v471_v24 = vpack.c.bf16 %v460_v22, %v459_v21  ;;  %v529_v26 = vld [vmem:[#allocation8 + $0x38] sm:$0xff]  ;;  %v457_v27 = vld [vmem:[#allocation6 + $0x30] sm:$0xff]  ;;  %v526_v31 = vld [vmem:[#allocation8 + $0x20] sm:$0xff]  ;;  %s1280_s17 = sshll.u32 %s447_s20, 4  ;;  %p2497_p11 = scmp.ne.s32.totalorder %s2486_s28, 0  ;;  %s2416_s17 = int_to_ptr.vmem [resolvable:$true] %s1280_s17 }
  0x8b   : > { %1516 = vmatpush3.bf16.msra.mxu1 %v544_v11  ;;  %v458_v28 = vld [vmem:[#allocation6 + $0x38] sm:$0xff]  ;;  %v541_v29 = vpack.c.bf16 %v529_v26, %v528_v25  ;;  %v527_v32 = vld [vmem:[#allocation8 + $0x28] sm:$0xff]  ;;  %v455_v33 = vld [vmem:[#allocation6 + $0x20] sm:$0xff]  ;;  %s1922_s19 = scalar_lea.vmem %s2416_s17, 128  ;;  %s2016_s3 = smov [#allocation14]  }
  0x8c   : > { %1496 = vmatpush3.bf16.msra.mxu0 %v473_v12  ;;  %1517 = vmatprep.subr.bf16.mxu1 %v2008_v0  ;;  %v470_v30 = vpack.c.bf16 %v458_v28, %v457_v27  ;;  %v456_v34 = vld [vmem:[#allocation6 + $0x28] sm:$0xff]  ;;  %v540_v35 = vpack.c.bf16 %v527_v32, %v526_v31  ;;  %v524_v37 = vld [vmem:[#allocation8 + $0x10] sm:$0xff]  ;;  %v525_v38 = vld [vmem:[#allocation8 + $0x18] sm:$0xff]  ;;  %p1923_p8 = scmp.ne.s32.totalorder %s2416_s17, %s1922_s19  ;;  %s1926_s18 = sshll.u32 %s2016_s3, 4  ;;  %s1927_s18 = int_to_ptr.vmem [resolvable:$false] %s1926_s18 }
  0x8d   : > { %1497 = vmatprep.subr.bf16.mxu0 %v2008_v0  ;;  %v469_v36 = vpack.c.bf16 %v456_v34, %v455_v33  ;;  %v453_v39 = vld [vmem:[#allocation6 + $0x10] sm:$0xff]  ;;  %v454_v40 = vld [vmem:[#allocation6 + $0x18] sm:$0xff]  ;;  %v539_v41 = vpack.c.bf16 %v525_v38, %v524_v37  ;;  %v522_v43 = vld [vmem:[#allocation8] sm:$0xff]  ;;  %s1928_s24 = scalar_lea.vmem %s1927_s18, 256  ;;  %p1929_p5 = scmp.lt.s32.totalorder %s2416_s17, %s1927_s18 }
  0x8e   : > { %v468_v42 = vpack.c.bf16 %v454_v40, %v453_v39  ;;  %v523_v44 = vld [vmem:[#allocation8 + $0x8] sm:$0xff]  ;;  %v451_v45 = vld [vmem:[#allocation6] sm:$0xff]  ;;  %v2284_v48 = vld [vmem:[%s2246_s9] sm:$0xff]  ;;  %p1924_p0 = pnand %p1923_p8, %p2497_p11  ;;  %p1930_p9 = scmp.lt.s32.totalorder %s1928_s24, %s1922_s19 }
  0x8f   : > { %1518 = vmatpush3.bf16.msra.mxu1 %v543_v17  ;;  %v452_v46 = vld [vmem:[#allocation6 + $0x8] sm:$0xff]  ;;  %v538_v47 = vpack.c.bf16 %v523_v44, %v522_v43  ;;  %v2290_v50 = vpack.c.bf16 %v2284_v48, %v2284_v48  ;;  %v607_v3 = vld [vmem:[#allocation9 + $0x70] sm:$0xff]  ;;  %v608_v4 = vld [vmem:[#allocation9 + $0x78] sm:$0xff] }
  0x90   : > { %1498 = vmatpush3.bf16.msra.mxu0 %v472_v18  ;;  %1519 = vmatprep.subr.bf16.mxu1 %v2008_v0  ;;  %v467_v49 = vpack.c.bf16 %v452_v46, %v451_v45  ;;  %v1417_v51 = vld [vmem:[%s2462_s5] ss:$0 sm:$0xff]  ;;  %v605_v5 = vld [vmem:[#allocation9 + $0x60] sm:$0xff]  ;;  %v616_v6 = vpack.c.bf16 %v608_v4, %v607_v3  ;;  %v603_v9 = vld [vmem:[#allocation9 + $0x50] sm:$0xff]  ;;  %p1925_p13 = pneg %p1924_p0  ;;  %p1931_p10 = por %p1930_p9, %p1929_p5 }
  0x91   : > { %1499 = vmatprep.subr.bf16.mxu0 %v2008_v0  ;;  %v1416_v52 = vld [vmem:[%s2461_s4] ss:$0 sm:$0xff]  ;;  %v604_v10 = vld [vmem:[#allocation9 + $0x58] sm:$0xff]  ;;  %v601_v12 = vld [vmem:[#allocation9 + $0x40] sm:$0xff] }
  0x92   : > { %v606_v7 = vld [vmem:[#allocation9 + $0x68] sm:$0xff]  ;;  %v614_v11 = vpack.c.bf16 %v604_v10, %v603_v9  ;;  %v599_v15 = vld [vmem:[#allocation9 + $0x30] sm:$0xff]  ;;  %v600_v16 = vld [vmem:[#allocation9 + $0x38] sm:$0xff]  ;;  %p1932_p1 = pnand %p1931_p10, %p1925_p13 }
  0x93   : > { %1520 = vmatpush3.bf16.msra.mxu1 %v542_v23  ;;  %v615_v8 = vpack.c.bf16 %v606_v7, %v605_v5  ;;  %v602_v13 = vld [vmem:[#allocation9 + $0x48] sm:$0xff]  ;;  %v612_v17 = vpack.c.bf16 %v600_v16, %v599_v15  ;;  %v597_v18 = vld [vmem:[#allocation9 + $0x20] sm:$0xff]  ;;  %v595_v21 = vld [vmem:[#allocation9 + $0x10] sm:$0xff] }
  0x94   : > { %1500 = vmatpush3.bf16.msra.mxu0 %v471_v24  ;;  %1521 = vmatprep.subr.bf16.mxu1 %v2008_v0  ;;  %v613_v14 = vpack.c.bf16 %v602_v13, %v601_v12  ;;  %v598_v19 = vld [vmem:[#allocation9 + $0x28] sm:$0xff]  ;;  %v596_v22 = vld [vmem:[#allocation9 + $0x18] sm:$0xff]  ;;  %v593_v24 = vld [vmem:[#allocation9] sm:$0xff] }
  0x95   : > { %1501 = vmatprep.subr.bf16.mxu0 %v2008_v0  ;;  %v611_v20 = vpack.c.bf16 %v598_v19, %v597_v18  ;;  %v610_v23 = vpack.c.bf16 %v596_v22, %v595_v21  ;;  %v594_v25 = vld [vmem:[#allocation9 + $0x8] sm:$0xff] }
  0x96   : > { %v609_v26 = vpack.c.bf16 %v594_v25, %v593_v24  ;;  %v1418_v37 = vld [vmem:[%s2463_s6] ss:$0 sm:$0xff] }
  0x97   : > { %1522 = vmatpush3.bf16.msra.mxu1 %v541_v29 }
  0x98   : > { %1502 = vmatpush3.bf16.msra.mxu0 %v470_v30  ;;  %1523 = vmatprep.subr.bf16.mxu1 %v2008_v0 }
  0x99   : > { %1503 = vmatprep.subr.bf16.mxu0 %v2008_v0 }
  0x9b   : > { %1524 = vmatpush3.bf16.msra.mxu1 %v540_v35 }
  0x9c   : > { %1504 = vmatpush3.bf16.msra.mxu0 %v469_v36  ;;  %1525 = vmatprep.subr.bf16.mxu1 %v2008_v0 }
  0x9d   : > { %1505 = vmatprep.subr.bf16.mxu0 %v2008_v0 }
  0x9f   : > { %1526 = vmatpush3.bf16.msra.mxu1 %v539_v41 }
  0xa0   : > { %1506 = vmatpush3.bf16.msra.mxu0 %v468_v42  ;;  %1527 = vmatprep.subr.bf16.mxu1 %v2008_v0 }
  0xa1   : > { %1507 = vmatprep.subr.bf16.mxu0 %v2008_v0 }
  0xa3   : > { %1528 = vmatpush3.bf16.msra.mxu1 %v538_v47 }
  0xa4   : > { %1508 = vmatpush3.bf16.msra.mxu0 %v467_v49  ;;  %1553 = vmatprep.subr.bf16.mxu1 %v2008_v0 }
  0xa5   : > { %1533 = vmatprep.subr.bf16.mxu0 %v2008_v0 }
  0xa6   : > { %1530 = vmatmul.mubr.bf16.vlgmr.msra.gmra.mxu1 %v2290_v50 }
  0xa7   : > { %1510 = vmatmul.mubr.bf16.vlgmr.msra.gmra.mxu0 %v2290_v50  ;;  %1555 = vmatprep.mubr.msk.bf16.mxu1 %vm2009_vm0, %v2008_v0 }
  0xa8   : > { %1549 = vmatprep.mubr.msk.bf16.mxu0 %vm2009_vm0, %v2008_v0  ;;  %1534 = vmatpush3.bf16.msra.mxu0 %v616_v6 }
  0xa9   : > { %1535 = vmatprep.subr.bf16.mxu0 %v2008_v0 }
  0xac   : > { %1536 = vmatpush3.bf16.msra.mxu0 %v615_v8 }
  0xad   : > { %1537 = vmatprep.subr.bf16.mxu0 %v2008_v0 }
  0xb0   : > { %1538 = vmatpush3.bf16.msra.mxu0 %v614_v11 }
  0xb1   : > { %1539 = vmatprep.subr.bf16.mxu0 %v2008_v0 }
  0xb4   : > { %1540 = vmatpush3.bf16.msra.mxu0 %v613_v14 }
  0xb5   : > { %1541 = vmatprep.subr.bf16.mxu0 %v2008_v0 }
  0xb8   : > { %1542 = vmatpush3.bf16.msra.mxu0 %v612_v17 }
  0xb9   : > { %1543 = vmatprep.subr.bf16.mxu0 %v2008_v0 }
  0xbc   : > { %1544 = vmatpush3.bf16.msra.mxu0 %v611_v20 }
  0xbd   : > { %1545 = vmatprep.subr.bf16.mxu0 %v2008_v0 }
  0xc0   : > { %1546 = vmatpush3.bf16.msra.mxu0 %v610_v23 }
  0xc1   : > { %1547 = vmatprep.subr.bf16.mxu0 %v2008_v0 }
  0xc4   : > { %1548 = vmatpush3.bf16.msra.mxu0 %v609_v26 }
  0xc5   : > { %1577 = vmatprep.subr.bf16.mxu0 %v2008_v0 }
  0xc7   : > { %1550 = vmatmul.mubr.bf16.vlgmr.msra.gmra.mxu0 %v2290_v50 }
  0xc8   : > { %1579 = vmatprep.mubr.msk.bf16.mxu0 %vm2009_vm0, %v2008_v0 }
 0x166   : > { %v587_v53 = vpop.f32.mrf.mxu1 }
 0x167   : > { %v588_v54 = vadd.f32 %v1417_v51, %v587_v53  ;;  %v516_v55 = vpop.f32.mrf.mxu0 }
 0x168   : > { %v1531_v56 = vpop.f32.mrf.mxu1  ;;  %v517_v57 = vadd.f32 %v1416_v52, %v516_v55 }
 0x169   : > { %v2306_v58 = vpack.c.bf16 %v588_v54, %v588_v54  ;;  %v1511_v59 = vpop.f32.mrf.mxu0 }
 0x16a   : > { %v590_v60 = vpop.f32.mrf.mxu1  ;;  %v665_v61 = vpack.c.bf16 %v517_v57, %v517_v57 }
 0x16b   : > { %779 = vrot.lane.b32.xlu1 %v2306_v58, %s2010_s30  ;;  %v673_v62 = vsel %vm668_vm1, %v2306_v58, 0  ;;  %v519_v63 = vpop.f32.mrf.mxu0 }
 0x16c   : > { %v1532_v1 = vpop.f32.mrf.mxu1  ;;  %1554 = vmatpush3.bf16.xpose.msra.mxu1 %v673_v62 }
 0x16d   : > { %v1512_v2 = vpop.f32.mrf.mxu0  ;;  %1559 = vmatprep.subr.bf16.mxu1 %v2008_v0 }
 0x16f   : > { %776 = vrot.lane.b32.xlu1 %v665_v61, %s2010_s30 }
 0x173   : > { %894 = vrot.lane.b32.xlu1 %v665_v61, %s2011_s23  ;;  %1556 = vmatmul.mubr.msk.bf16.vlgmr.msra.gmra.mxu1 %vm668_vm1, %v665_v61 }
 0x174   : > { %1561 = vmatprep.mubr.msk.bf16.mxu1 %vm2009_vm0, %v2008_v0 }
 0x177   : > { %1012 = vrot.lane.b32.xlu1 %v2306_v58, %s2012_s21 }
 0x17b   : > { %1010 = vrot.lane.b32.xlu1 %v665_v61, %s2012_s21 }
 0x187   : > { %v658_v38 = vpop.f32.mrf.mxu0 }
 0x188   : > { %v659_v39 = vadd.f32 %v1418_v37, %v658_v38 }
 0x189   : > { %v1551_v40 = vpop.f32.mrf.mxu0 }
 0x18a   : > { %v2337_v41 = vpack.c.bf16 %v659_v39, %v659_v39 }
 0x18b   : > { %v661_v42 = vpop.f32.mrf.mxu0 }
 0x18c   : > { %v732_v44 = vsel %vm730_vm2, %v2337_v41, 0 }
 0x18d   : > { %v1552_v43 = vpop.f32.mrf.mxu0  ;;  %1560 = vmatpush3.bf16.msra.mxu1 %v732_v44 }
 0x18e   : > { %1565 = vmatprep.subr.bf16.mxu1 %v2008_v0 }
 0x1dd   : > { %v780_v45 = vpop.permute.xlu1 %779 }
 0x1de   : > { %v785_v57 = vsel %vm668_vm1, %v780_v45, 0 }
 0x1e1   : > { %v777_v46 = vpop.permute.xlu1 %776 }
 0x1e5   : > { %v895_v49 = vpop.permute.xlu1 %894 }
 0x1e9   : > { %v1013_v52 = vpop.permute.xlu1 %1012 }
 0x1ea   : > { %v1018_v53 = vsel %vm668_vm1, %v1013_v52, 0 }
 0x233   : > { %v709_v27 = vpop.f32.mrf.mxu1 }
 0x234   : > { %v715_v28 = vsel %vm668_vm1, %v709_v27, -inf }
 0x235   : > { %716 = vmax.xlane.f32.xlu0 %v715_v28  ;;  %v1557_v29 = vpop.f32.mrf.mxu1 }
 0x237   : > { %v712_v30 = vpop.f32.mrf.mxu1 }
 0x239   : > { %v1558_v31 = vpop.f32.mrf.mxu1 }
 0x2be   : > { %v717_v32 = vpop.xlane.xlu0 %716 }
 0x2bf   : > { %v718_v33 = vsub.f32 %v709_v27, %v717_v32 }
 0x2c1   : > { %v719_v34 = vmul.f32 1.442695, %v718_v33 }
 0x2c3   : > { %1748 = vpow2.f32 %v719_v34 }
 0x2d0   : > { %v1749_v35 = vpop.eup %1748 }
 0x2d1   : > { %v721_v36 = vsel %vm668_vm1, %v1749_v35, 0.0 }
 0x2d2   : > { %722 = vadd.xlane.f32.xlu0 %v721_v36 }
 0x2e8   : > { %896 = vrot.lane.b32.xlu0 %v2306_v58, %s2011_s23  ;;  %v1011_v58 = vpop.permute.xlu1 %1010 }
 0x35b   : > { %v723_v47 = vpop.xlane.xlu0 %722 }
 0x35c   : > { %1750 = vrcp.f32 %v723_v47 }
 0x35f   : > { %v897_v50 = vpop.permute.xlu0 %896 }
 0x360   : > { %v902_v51 = vsel %vm668_vm1, %v897_v50, 0  ;;  %v1143_v50 = vld [vmem:[#allocation11 + $0x78] sm:$0xff] }
 0x361   : > { %1578 = vmatpush3.bf16.xpose.msra.mxu0 %v902_v51  ;;  %v1140_v51 = vld [vmem:[#allocation11 + $0x60] sm:$0xff] }
 0x362   : > { %1589 = vmatprep.subr.bf16.mxu0 %v2008_v0 }
 0x368   : > { %1580 = vmatmul.mubr.msk.bf16.vlgmr.msra.gmra.mxu0 %vm668_vm1, %v895_v49  ;;  %v1142_v49 = vld [vmem:[#allocation11 + $0x70] sm:$0xff] }
 0x369   : > { %v1751_v54 = vpop.eup %1750  ;;  %1590 = vmatpush3.bf16.xpose.msra.mxu0 %v1018_v53  ;;  %1591 = vmatprep.mubr.msk.bf16.mxu0 %vm2009_vm0, %v2008_v0  ;;  %v1151_v52 = vpack.c.bf16 %v1143_v50, %v1142_v49  ;;  %v1141_v53 = vld [vmem:[#allocation11 + $0x68] sm:$0xff]  ;;  %v1201_v49 = vld [vmem:[#allocation12] sm:$0xff] }
 0x36a   : > { %v725_v55 = vmul.f32 %v1751_v54, %v1749_v35  ;;  %1601 = vmatprep.subr.bf16.mxu0 %v2008_v0  ;;  %v1150_v54 = vpack.c.bf16 %v1141_v53, %v1140_v51  ;;  %v1202_v50 = vld [vmem:[#allocation12 + $0x8] sm:$0xff] }
 0x36b   : > { %v1217_v51 = vpack.c.bf16 %v1202_v50, %v1201_v49 }
 0x36c   : > { %v726_v56 = vpack.c.bf16 %v725_v55, %v725_v55  ;;  %v1138_v55 = vld [vmem:[#allocation11 + $0x50] sm:$0xff] }
 0x36e   : > { %1562 = vmatmul.mubr.msk.bf16.vlgmr.msra.gmra.mxu1 %vm668_vm1, %v726_v56  ;;  %v1139_v56 = vld [vmem:[#allocation11 + $0x58] sm:$0xff] }
 0x36f   : > { %1566 = vmatpush3.bf16.xpose.msra.mxu1 %v785_v57  ;;  %1567 = vmatprep.mubr.msk.bf16.mxu1 %vm2009_vm0, %v2008_v0  ;;  %v1136_v57 = vld [vmem:[#allocation11 + $0x40] sm:$0xff] }
 0x370   : > { %1592 = vmatmul.mubr.msk.bf16.vlgmr.msra.gmra.mxu0 %vm668_vm1, %v1011_v58  ;;  %1571 = vmatprep.subr.bf16.mxu1 %v2008_v0  ;;  %v1149_v58 = vpack.c.bf16 %v1139_v56, %v1138_v55 }
 0x371   : > { %1617 = vmatprep.mubr.msk.bf16.mxu0 %vm2009_vm0, %v2008_v0  ;;  %1602 = vmatpush3.bf16.msra.mxu0 %v1151_v52  ;;  %v1427_v52 = vld [vmem:[%s2465_s8] ss:$0 sm:$0xff] }
 0x372   : > { %1603 = vmatprep.subr.bf16.mxu0 %v2008_v0 }
 0x375   : > { %1604 = vmatpush3.bf16.msra.mxu0 %v1150_v54 }
 0x376   : > { %1568 = vmatmul.mubr.msk.bf16.vlgmr.msra.gmra.mxu1 %vm668_vm1, %v777_v46  ;;  %1605 = vmatprep.subr.bf16.mxu0 %v2008_v0 }
 0x377   : > { %1573 = vmatprep.mubr.msk.bf16.mxu1 %vm2009_vm0, %v2008_v0 }
 0x379   : > { %1606 = vmatpush3.bf16.msra.mxu0 %v1149_v58 }
 0x37a   : > { %1607 = vmatprep.subr.bf16.mxu0 %v2008_v0 }
 0x428   : > { %v938_v59 = vpop.f32.mrf.mxu0 }
 0x429   : > { %v944_v60 = vsel %vm668_vm1, %v938_v59, -inf }
 0x42a   : > { %945 = vmax.xlane.f32.xlu0 %v944_v60  ;;  %v1581_v61 = vpop.f32.mrf.mxu0 }
 0x42b   : > { %v1134_v61 = vld [vmem:[#allocation11 + $0x30] sm:$0xff] }
 0x42c   : > { %v941_v62 = vpop.f32.mrf.mxu0 }
 0x42d   : > { %v1135_v62 = vld [vmem:[#allocation11 + $0x38] sm:$0xff] }
 0x42e   : > { %v768_v63 = vpop.f32.mrf.mxu1  ;;  %v1582_v1 = vpop.f32.mrf.mxu0 }
 0x42f   : > { %774 = vst.msk [vmem:[#allocation2] sm:$0xff] %vm668_vm1, %v768_v63  ;;  %v1132_v63 = vld [vmem:[#allocation11 + $0x20] sm:$0xff]  ;;  %v1147_v1 = vpack.c.bf16 %v1135_v62, %v1134_v61 }
 0x430   : > { %v1563_v2 = vpop.f32.mrf.mxu1  ;;  %v1054_v3 = vpop.f32.mrf.mxu0 }
 0x431   : > { %v1060_v13 = vsel %vm668_vm1, %v1054_v3, -inf  ;;  %v1133_v2 = vld [vmem:[#allocation11 + $0x28] sm:$0xff] }
 0x432   : > { %v771_v4 = vpop.f32.mrf.mxu1  ;;  %v1593_v5 = vpop.f32.mrf.mxu0 }
 0x434   : > { %v1564_v6 = vpop.f32.mrf.mxu1  ;;  %v1057_v7 = vpop.f32.mrf.mxu0 }
 0x435   : > { %v1130_v7 = vld [vmem:[#allocation11 + $0x10] sm:$0xff] }
 0x436   : > { %v821_v8 = vpop.f32.mrf.mxu1  ;;  %v1594_v9 = vpop.f32.mrf.mxu0 }
 0x437   : > { %v827_v10 = vsel %vm668_vm1, %v821_v8, -inf  ;;  %v1128_v9 = vld [vmem:[#allocation11] sm:$0xff] }
 0x438   : > { %828 = vmax.xlane.f32.xlu1 %v827_v10  ;;  %v1569_v11 = vpop.f32.mrf.mxu1 }
 0x439   : > { %v1129_v11 = vld [vmem:[#allocation11 + $0x8] sm:$0xff] }
 0x43a   : > { %v824_v12 = vpop.f32.mrf.mxu1 }
 0x43c   : > { %v1570_v14 = vpop.f32.mrf.mxu1  ;;  %1061 = vmax.xlane.f32.xlu1 %v1060_v13  ;;  %v1144_v13 = vpack.c.bf16 %v1129_v11, %v1128_v9 }
 0x4b3   : > { %v946_v15 = vpop.xlane.xlu0 %945 }
 0x4b4   : > { %v947_v16 = vsub.f32 %v938_v59, %v946_v15  ;;  %v1137_v59 = vld [vmem:[#allocation11 + $0x48] sm:$0xff] }
 0x4b5   : > { %v1148_v60 = vpack.c.bf16 %v1137_v59, %v1136_v57 }
 0x4b6   : > { %v948_v17 = vmul.f32 1.442695, %v947_v16 }
 0x4b7   : > { %1608 = vmatpush3.bf16.msra.mxu0 %v1148_v60 }
 0x4b8   : > { %1752 = vpow2.f32 %v948_v17  ;;  %1609 = vmatprep.subr.bf16.mxu0 %v2008_v0 }
 0x4bb   : > { %1610 = vmatpush3.bf16.msra.mxu0 %v1147_v1 }
 0x4bc   : > { %1611 = vmatprep.subr.bf16.mxu0 %v2008_v0 }
 0x4c1   : > { %v829_v18 = vpop.xlane.xlu1 %828 }
 0x4c2   : > { %v830_v19 = vsub.f32 %v821_v8, %v829_v18  ;;  %v1131_v8 = vld [vmem:[#allocation11 + $0x18] sm:$0xff]  ;;  %v1215_v18 = vld [vmem:[#allocation12 + $0x70] sm:$0xff] }
 0x4c3   : > { %v1145_v10 = vpack.c.bf16 %v1131_v8, %v1130_v7 }
 0x4c4   : > { %v831_v24 = vmul.f32 1.442695, %v830_v19  ;;  %v1216_v19 = vld [vmem:[#allocation12 + $0x78] sm:$0xff] }
 0x4c5   : > { %v1753_v20 = vpop.eup %1752  ;;  %v1062_v21 = vpop.xlane.xlu1 %1061 }
 0x4c6   : > { %v1063_v22 = vsub.f32 %v1054_v3, %v1062_v21  ;;  %v950_v23 = vsel %vm668_vm1, %v1753_v20, 0.0  ;;  %v1146_v3 = vpack.c.bf16 %v1133_v2, %v1132_v63  ;;  %v1224_v21 = vpack.c.bf16 %v1216_v19, %v1215_v18 }
 0x4c7   : > { %951 = vadd.xlane.f32.xlu0 %v950_v23 }
 0x4c8   : > { %v1064_v25 = vmul.f32 1.442695, %v1063_v22  ;;  %1612 = vmatpush3.bf16.msra.mxu0 %v1146_v3  ;;  %v1214_v22 = vld [vmem:[#allocation12 + $0x68] sm:$0xff] }
 0x4c9   : > { %1613 = vmatprep.subr.bf16.mxu0 %v2008_v0 }
 0x4ca   : > { %1754 = vpow2.f32 %v1064_v25 }
 0x4cb   : > { %1756 = vpow2.f32 %v831_v24 }
 0x4cc   : > { %1614 = vmatpush3.bf16.msra.mxu0 %v1145_v10 }
 0x4cd   : > { %1615 = vmatprep.subr.bf16.mxu0 %v2008_v0 }
 0x4d0   : > { %1616 = vmatpush3.bf16.msra.mxu0 %v1144_v13 }
 0x4d7   : > { %v1755_v26 = vpop.eup %1754 }
 0x4d8   : > { %v1066_v27 = vsel %vm668_vm1, %v1755_v26, 0.0  ;;  %v1757_v28 = vpop.eup %1756 }
 0x4d9   : > { %1067 = vadd.xlane.f32.xlu1 %v1066_v27  ;;  %v833_v29 = vsel %vm668_vm1, %v1757_v28, 0.0  ;;  %v1212_v27 = vld [vmem:[#allocation12 + $0x58] sm:$0xff] }
 0x4dd   : > { %840 = vrot.lane.b32.xlu0 %v2337_v41, %s2010_s30  ;;  %834 = vadd.xlane.f32.xlu1 %v833_v29 }
 0x4ee   : > { %956 = vrot.lane.b32.xlu1 %v2337_v41, %s2011_s23  ;;  %s2414_s23 = scalar_lea.hbm %s2467_s10, %s1429_s1 }
 0x4f2   : > { %1072 = vrot.lane.b32.xlu1 %v2337_v41, %s2012_s21  ;;  %s1267_s21 = scalar_lea.sflag [#allocation5], %s2240_s2 }
 0x550   : > { %v952_v30 = vpop.xlane.xlu0 %951 }
 0x554   : > { %v841_v31 = vpop.permute.xlu0 %840 }
 0x555   : > { %v846_v32 = vsel %vm730_vm2, %v841_v31, 0  ;;  %v1209_v31 = vld [vmem:[#allocation12 + $0x40] sm:$0xff] }
 0x556   : > { %1572 = vmatpush3.bf16.msra.mxu1 %v846_v32  ;;  %v1210_v32 = vld [vmem:[#allocation12 + $0x48] sm:$0xff] }
 0x557   : > { %1583 = vmatprep.subr.bf16.mxu1 %v2008_v0 }
 0x562   : > { %v1068_v33 = vpop.xlane.xlu1 %1067 }
 0x566   : > { %v835_v34 = vpop.xlane.xlu1 %834 }
 0x567   : > { %1758 = vrcp.f32 %v835_v34  ;;  %v1207_v34 = vld [vmem:[#allocation12 + $0x30] sm:$0xff] }
 0x568   : > { %1760 = vrcp.f32 %v952_v30 }
 0x569   : > { %1762 = vrcp.f32 %v1068_v33  ;;  %v1221_v33 = vpack.c.bf16 %v1210_v32, %v1209_v31 }
 0x56a   : > { %v957_v37 = vpop.permute.xlu1 %956 }
 0x56b   : > { %v962_v40 = vsel %vm730_vm2, %v957_v37, 0  ;;  %v1205_v37 = vld [vmem:[#allocation12 + $0x20] sm:$0xff] }
 0x56e   : > { %v1073_v42 = vpop.permute.xlu1 %1072 }
 0x56f   : > { %v1078_v45 = vsel %vm730_vm2, %v1073_v42, 0 }
 0x574   : > { %v1759_v35 = vpop.eup %1758 }
 0x575   : > { %v837_v36 = vmul.f32 %v1759_v35, %v1757_v28  ;;  %v1761_v39 = vpop.eup %1760  ;;  %v1208_v35 = vld [vmem:[#allocation12 + $0x38] sm:$0xff] }
 0x576   : > { %v954_v41 = vmul.f32 %v1761_v39, %v1753_v20  ;;  %v1763_v44 = vpop.eup %1762  ;;  %v1213_v20 = vld [vmem:[#allocation12 + $0x60] sm:$0xff] }
 0x577   : > { %v838_v38 = vpack.c.bf16 %v837_v36, %v837_v36  ;;  %v1070_v46 = vmul.f32 %v1763_v44, %v1755_v26  ;;  %v1223_v24 = vpack.c.bf16 %v1214_v22, %v1213_v20  ;;  %v1211_v26 = vld [vmem:[#allocation12 + $0x50] sm:$0xff]  ;;  %v1220_v36 = vpack.c.bf16 %v1208_v35, %v1207_v34 }
 0x578   : > { %v955_v43 = vpack.c.bf16 %v954_v41, %v954_v41  ;;  %v1222_v29 = vpack.c.bf16 %v1212_v27, %v1211_v26 }
 0x579   : > { %1574 = vmatmul.mubr.msk.bf16.vlgmr.msra.gmra.mxu1 %vm668_vm1, %v838_v38  ;;  %v1071_v47 = vpack.c.bf16 %v1070_v46, %v1070_v46  ;;  %v1206_v38 = vld [vmem:[#allocation12 + $0x28] sm:$0xff]  ;;  %v1204_v46 = vld [vmem:[#allocation12 + $0x18] sm:$0xff] }
 0x57a   : > { %1584 = vmatpush3.bf16.msra.mxu1 %v962_v40  ;;  %1585 = vmatprep.mubr.msk.bf16.mxu1 %vm2009_vm0, %v2008_v0  ;;  %v1219_v39 = vpack.c.bf16 %v1206_v38, %v1205_v37 }
 0x57b   : > { %1595 = vmatprep.subr.bf16.mxu1 %v2008_v0 }
 0x581   : > { %1586 = vmatmul.mubr.msk.bf16.vlgmr.msra.gmra.mxu1 %vm668_vm1, %v955_v43 }
 0x582   : > { %1596 = vmatpush3.bf16.msra.mxu1 %v1078_v45  ;;  %1597 = vmatprep.mubr.msk.bf16.mxu1 %vm2009_vm0, %v2008_v0  ;;  %v1203_v45 = vld [vmem:[#allocation12 + $0x10] sm:$0xff] }
 0x583   : > { %1621 = vmatprep.subr.bf16.mxu1 %v2008_v0 }
 0x589   : > { %1598 = vmatmul.mubr.msk.bf16.vlgmr.msra.gmra.mxu1 %vm668_vm1, %v1071_v47  ;;  %v1218_v47 = vpack.c.bf16 %v1204_v46, %v1203_v45 }
 0x58a   : > { %1637 = vmatprep.mubr.msk.bf16.mxu1 %vm2009_vm0, %v2008_v0  ;;  %1622 = vmatpush3.bf16.msra.mxu1 %v1224_v21 }
 0x58b   : > { %1623 = vmatprep.subr.bf16.mxu1 %v2008_v0 }
 0x58e   : > { %1624 = vmatpush3.bf16.msra.mxu1 %v1223_v24 }
 0x58f   : > { %1625 = vmatprep.subr.bf16.mxu1 %v2008_v0 }
 0x592   : > { %1626 = vmatpush3.bf16.msra.mxu1 %v1222_v29 }
 0x593   : > { %1627 = vmatprep.subr.bf16.mxu1 %v2008_v0 }
 0x596   : > { %1628 = vmatpush3.bf16.msra.mxu1 %v1221_v33 }
 0x597   : > { %1629 = vmatprep.subr.bf16.mxu1 %v2008_v0 }
 0x59a   : > { %1630 = vmatpush3.bf16.msra.mxu1 %v1220_v36 }
 0x59b   : > { %1631 = vmatprep.subr.bf16.mxu1 %v2008_v0 }
 0x59e   : > { %1632 = vmatpush3.bf16.msra.mxu1 %v1219_v39 }
 0x59f   : > { %1633 = vmatprep.subr.bf16.mxu1 %v2008_v0 }
 0x5a2   : > { %1634 = vmatpush3.bf16.msra.mxu1 %v1218_v47 }
 0x5a3   : > { %1635 = vmatprep.subr.bf16.mxu1 %v2008_v0 }
 0x5a6   : > { %1636 = vmatpush3.bf16.msra.mxu1 %v1217_v51 }
 0x639   : > { %v882_v4 = vpop.f32.mrf.mxu1 }
 0x63a   : > { %889 = vrot.lane.b32.xlu0 %v882_v4, %s2013_s25 }
 0x63b   : > { %v1575_v5 = vpop.f32.mrf.mxu1 }
 0x63d   : > { %v885_v6 = vpop.f32.mrf.mxu1 }
 0x63f   : > { %v1576_v12 = vpop.f32.mrf.mxu1 }
 0x641   : > { %v998_v14 = vpop.f32.mrf.mxu1 }
 0x642   : > { %1005 = vrot.lane.b32.xlu1 %v998_v14, %s2014_s22 }
 0x643   : > { %v1587_v15 = vpop.f32.mrf.mxu1 }
 0x645   : > { %v1001_v16 = vpop.f32.mrf.mxu1 }
 0x647   : > { %v1588_v17 = vpop.f32.mrf.mxu1 }
 0x649   : > { %v1114_v23 = vpop.f32.mrf.mxu1 }
 0x64a   : > { %1121 = vrot.lane.b32.xlu0 %v1114_v23, %s2015_s29 }
 0x64b   : > { %v1599_v25 = vpop.f32.mrf.mxu1 }
 0x64d   : > { %v1117_v28 = vpop.f32.mrf.mxu1 }
 0x64f   : > { %v1600_v30 = vpop.f32.mrf.mxu1 }
 0x6ac   : > { %v890_v40 = vpop.permute.xlu0 %889 }
 0x6ad   : > { %893 = vst.msk [vmem:[#allocation2] sm:$0xff] %vm892_vm3, %v890_v40 }
 0x6b4   : > { %v1006_v41 = vpop.permute.xlu1 %1005 }
 0x6b5   : > { %1009 = vst.msk [vmem:[#allocation2] sm:$0xff] %vm1008_vm4, %v1006_v41 }
 0x6bc   : > { %v1122_v42 = vpop.permute.xlu0 %1121 }
 0x6bd   : > { %1125 = vst.msk [vmem:[#allocation2] sm:$0xff] %vm1124_vm5, %v1122_v42 }
 0x6c4   : > { %v1126_v43 = vld [vmem:[#allocation2] sm:$0xff] }
 0x6c5   : > { %v1127_v44 = vpack.c.bf16 %v1126_v43, %v1126_v43 }
 0x6c7   : > { %1618 = vmatmul.mubr.bf16.vlgmr.msra.gmra.mxu0 %v1127_v44 }
 0x787   : > { %v1193_v53 = vpop.f32.mrf.mxu0 }
 0x788   : > { %v1194_v54 = vadd.f32 %v1427_v52, %v1193_v53 }
 0x789   : > { %v1619_v55 = vpop.f32.mrf.mxu0 }
 0x78a   : > { %v1199_v56 = vadd.f32 %v1194_v54, %v2284_v48 }
 0x78b   : > { %v1196_v57 = vpop.f32.mrf.mxu0 }
 0x78c   : > { %v1200_v58 = vpack.c.bf16 %v1199_v56, %v1199_v56 }
 0x78d   : > { %v1620_v59 = vpop.f32.mrf.mxu0 }
 0x78e   : > { %1638 = vmatmul.mubr.bf16.vlgmr.msra.gmra.mxu1 %v1200_v58 }
 0x84e   : > { %v1259_v0 = vpop.f32.mrf.mxu1 }
 0x84f   : > { %v1260_v60 = vadd.f32 %v1259_v0, %v1199_v56 }
 0x850   : > { %v1639_v48 = vpop.f32.mrf.mxu1 }
 0x851   : > { %1265 = vst [vmem:[%s447_s20] sm:$0xff] %v1260_v60 }
 0x852   : > { %v1262_v61 = vpop.f32.mrf.mxu1 }
 0x853   : > { %1935 = shalt.err (!%p1932_p1)
}
 0x854   : > { %s1936_s25 = scalar_lea.hbm %s2414_s23, 128  ;;  %s1940_s29 = scalar_lea.hbm %s2467_s10, 256 }
 0x855   : > { %p1937_p3 = scmp.ne.s32.totalorder %s2414_s23, %s1936_s25  ;;  %p1941_p6 = scmp.lt.s32.totalorder %s2414_s23, %s2467_s10 }
 0x856   : > { %p1942_p2 = scmp.lt.s32.totalorder %s1940_s29, %s1936_s25 }
 0x857   : > { %p1938_p4 = pnand %p1937_p3, %p2497_p11 }
 0x858   : > { %p1943_p7 = por %p1942_p2, %p1941_p6 }
 0x859   : > { %p1939_p12 = pneg %p1938_p4 }
 0x85b   : > { %p1944_p8 = pnand %p1943_p7, %p1939_p12 }
 0x85d   : > { %1947 = shalt.err (!%p1944_p8)
}
 0x85e   : > { %1663 = dma.vmem_to_hbm [thread:$0]  (%p2497_p11), %s2416_s17, 128, %s2414_s23, %s1267_s21   ;;  %v1640_v62 = vpop.f32.mrf.mxu1 }
 0x85f PF: > { %s1292_s1 = sand.u32 1, %s1986_s13   ;;  %p2498_p0 = scmp.ne.s32.totalorder %s2487_s12, 0 }
 0x860   : > { %p2499_p13 = scmp.ge.s32.totalorder %s1998_s16, 2  ;;  %s1293_s20 = scalar_lea.sflag [#allocation5], %s1292_s1 }
 0x862   : > { %p1686_p5 = pnand %p2499_p13, %p2498_p0 }
 0x864   : > { %p1687_p9 = pneg %p1686_p5 }
 0x866   : > { %1981 = dma.done.wait (%p1687_p9), %s1293_s20, 128  }
 0x867   : > { %1983 = vsyncadd (%p1687_p9), %s1293_s20, 4294967168  ;;  %p26_p10 = scmp.ge.s32.totalorder %s2183_s26, 4   ;;  %s2500_s13 = smov %s1990_s14 }
 0x868   : > { %s2501_s14 = smov %s1994_s15  ;;  %s2502_s15 = smov %s2195_s11 }
 0x869   : > { %s2503_s16 = smov %s2183_s26  ;;  %28 = sbr.rel (!%p26_p10) target bundleno = 14 (0xe), region = 125 }
 0x86e   :  { %1298 = vsyncpa [#allocation4], 1 }
 0x86f   :  { %1300 = vsyncpa [#allocation4 + $0x1], 1 }
 0x870   :  { %1301 = vsyncpa [#allocation7], 1 }
 0x871   :  { %1302 = vsyncpa [#allocation10], 1 }
 0x872   :  { %1303 = vsyncpa [#allocation13], 1 }
 0x873   :  { %1304 = vsyncpa [#allocation5], 1 }
 0x874   :  { %1306 = vsyncpa [#allocation5 + $0x1], 1 }

// kernel: tpu_custom_call.1
= control target key start
LH: loop header
LB: loop body
LE: loop exit
PB: predicated region body
PF: predicated region fallthrough
CT: control target
= control target key end

     0   :  { %s2457_s0 = inlined_call_operand.hbm [shape: f32[2,8,128], index: 0, kind: input, shape index: {}]   ;;  %s2458_s1 = inlined_call_operand.hbm [shape: f32[128,128], index: 1, kind: input, shape index: {}]   ;;  %s2459_s2 = inlined_call_operand.hbm [shape: f32[128,128], index: 2, kind: input, shape index: {}]   ;;  %s2460_s3 = inlined_call_operand.hbm [shape: f32[128,128], index: 3, kind: input, shape index: {}]   ;;  %s2461_s4 = inlined_call_operand.vmem [shape: f32[1,128], index: 4, kind: input, shape index: {}]   ;;  %s2462_s5 = inlined_call_operand.vmem [shape: f32[1,128], index: 5, kind: input, shape index: {}]   ;;  %s2463_s6 = inlined_call_operand.vmem [shape: f32[1,128], index: 6, kind: input, shape index: {}]   ;;  %s2464_s7 = inlined_call_operand.hbm [shape: f32[128,128], index: 7, kind: input, shape index: {}]   ;;  %s2465_s8 = inlined_call_operand.vmem [shape: f32[1,128], index: 8, kind: input, shape index: {}]   ;;  %s2466_s9 = inlined_call_operand.hbm [shape: f32[128,128], index: 9, kind: input, shape index: {}]   ;;  %s2467_s10 = inlined_call_operand.hbm [shape: f32[2,8,128], index: 10, kind: output, shape index: {}]  }
   0x1   :  { %2472 = sst [smem:[#allocation20_spill]] %s2458_s1 }
   0x2   :  { %2473 = sst [smem:[#allocation21_spill]] %s2459_s2 }
   0x3   :  { %2474 = sst [smem:[#allocation22_spill]] %s2460_s3 }
   0x4   :  { %2475 = sst [smem:[#allocation23_spill]] %s2464_s7 }
   0x5   :  { %2476 = sst [smem:[#allocation24_spill]] %s2466_s9 }
   0x6   :  { %15 = vsyncpa [#allocation4], 0 }
   0x7   :  { %17 = vsyncpa [#allocation4 + $0x1], 0 }
   0x8   :  { %18 = vsyncpa [#allocation7], 0 }
   0x9   :  { %19 = vsyncpa [#allocation10], 0 }
   0xa   :  { %20 = vsyncpa [#allocation13], 0 }
   0xb   :  { %21 = vsyncpa [#allocation5], 0 }
   0xc   :  { %23 = vsyncpa [#allocation5 + $0x1], 0  ;;  %s2072_s13 = smov 0   ;;  %s2074_s14 = smov 0  }
   0xd   :  { %s2076_s15 = smov 0   ;;  %s2078_s16 = smov 0  }
   0xe LB: > { %s2000_s17 = smov [#allocation6]   ;;  %s2093_s19 = sadd.s32 4294967295, %s1998_s16   ;;  %s1998_s16 = sphi %s2078_s16, %s2503_s16   ;;  %s1994_s15 = sphi %s2076_s15, %s2502_s15   ;;  %s1990_s14 = sphi %s2074_s14, %s2501_s14   ;;  %s1986_s13 = sphi %s2072_s13, %s2500_s13  }
   0xf   : > { %s287_s18 = sshll.u32 %s2000_s17, 4  ;;  %p1399_p0 = scmp.ge.s32.totalorder %s1998_s16, 1  ;;  %s288_s18 = int_to_ptr.vmem [resolvable:$true] %s287_s18 }
  0x10   : > { %p2468_p1 = scmp.eq.s32.totalorder %s2093_s19, 0  ;;  %p275_p2 = scmp.lt.s32.totalorder %s1998_s16, 3 }
  0x11   : > { %s2001_s21 = smov [#allocation9]   ;;  %s2002_s24 = smov [#allocation8]  }
  0x12   : > { %p2098_p3 = pnand %p1399_p0, %p275_p2  ;;  %s313_s22 = sshll.u32 %s2001_s21, 4  ;;  %s2111_s22 = int_to_ptr.vmem [resolvable:$true] %s313_s22 }
  0x13   : > { %s300_s25 = sshll.u32 %s2002_s24, 4  ;;  %s1775_s27 = scalar_lea.vmem %s288_s18, 2048  ;;  %s2113_s25 = int_to_ptr.vmem [resolvable:$true] %s300_s25 }
  0x14   : > { %s2477_s20 = scalar_select %p2098_p3, 1, 0 }
  0x15   : > { %p1665_p5 = pneg %p2098_p3  ;;  %p1776_p8 = scmp.ne.s32.totalorder %s288_s18, %s1775_s27 }
  0x16   : > { %p1783_p11 = scmp.lt.s32.totalorder %s288_s18, %s288_s18  ;;  %p1784_p12 = scmp.lt.s32.totalorder %s1775_s27, %s1775_s27 }
  0x17   : > { %p2107_p6 = pnand %p1665_p5, %p2468_p1 }
  0x18   : > { %p1785_p13 = por %p1784_p12, %p1783_p11 }
  0x19   : > { %p2117_p7 = pneg %p2107_p6 }
  0x1b   : > { %p1778_p9 = pnand %p1776_p8, %p2117_p7 }
  0x1d   : > { %p1779_p10 = pneg %p1778_p9 }
  0x1f   : > { %p1786_p0 = pnand %p1785_p13, %p1779_p10 }
  0x21   : > { %1789 = shalt.err (!%p1786_p0)
}
  0x22   : > { %s2003_s28 = smov 128   ;;  %s2004_s29 = smov 8  }
  0x23   : > { %s2480_s1 = sld [smem:[#allocation20_spill]]  ;;  %s1801_s12 = scalar_lea.vmem %s2111_s22, 2048 }
  0x24   : > { %p1802_p2 = scmp.ne.s32.totalorder %s2111_s22, %s1801_s12  ;;  %p1809_p9 = scmp.lt.s32.totalorder %s2111_s22, %s2111_s22 }
  0x25   : > { %p1810_p10 = scmp.lt.s32.totalorder %s1801_s12, %s1801_s12 }
  0x26   : > { %p1804_p5 = pnand %p1802_p2, %p2117_p7 }
  0x27   : > { %p1811_p11 = por %p1810_p10, %p1809_p9 }
  0x28   : > { %p1805_p8 = pneg %p1804_p5 }
  0x29   : > { %1668 = dma.hbm_to_vmem [thread:$0]  (!%p2107_p6), %s2480_s1, 2048, %s288_s18, [#allocation7], %s2003_s28, %s2003_s28, %s2004_s29  }
  0x2a   : > { %p1812_p12 = pnand %p1811_p11, %p1805_p8 }
  0x2c   : > { %1815 = shalt.err (!%p1812_p12)
}
  0x2d   : > { %s2481_s3 = sld [smem:[#allocation22_spill]]  ;;  %s1827_s18 = scalar_lea.vmem %s2113_s25, 2048 }
  0x2e   : > { %p1828_p13 = scmp.ne.s32.totalorder %s2113_s25, %s1827_s18  ;;  %p1835_p5 = scmp.lt.s32.totalorder %s2113_s25, %s2113_s25 }
  0x2f   : > { %p1836_p8 = scmp.lt.s32.totalorder %s1827_s18, %s1827_s18 }
  0x30   : > { %p1830_p0 = pnand %p1828_p13, %p2117_p7 }
  0x31   : > { %p1837_p9 = por %p1836_p8, %p1835_p5 }
  0x32   : > { %p1831_p2 = pneg %p1830_p0 }
  0x33   : > { %1674 = dma.hbm_to_vmem [thread:$0]  (!%p2107_p6), %s2481_s3, 2048, %s2111_s22, [#allocation10], %s2003_s28, %s2003_s28, %s2004_s29  }
  0x34   : > { %p1838_p10 = pnand %p1837_p9, %p1831_p2 }
  0x36   : > { %1841 = shalt.err (!%p1838_p10)
}
  0x37   : > { %s2482_s2 = sld [smem:[#allocation21_spill]]  ;;  %s2005_s22 = smov [#allocation11]  }
  0x38   : > { %s335_s30 = sshll.u32 %s2005_s22, 4  ;;  %s2006_s11 = smov [#allocation12]   ;;  %s336_s30 = int_to_ptr.vmem [resolvable:$true] %s335_s30 }
  0x39   : > { %s351_s12 = sshll.u32 %s2006_s11, 4  ;;  %s1853_s17 = scalar_lea.vmem %s336_s30, 2048  ;;  %s352_s12 = int_to_ptr.vmem [resolvable:$true] %s351_s12 }
  0x3a   : > { %p1854_p11 = scmp.ne.s32.totalorder %s336_s30, %s1853_s17  ;;  %p1861_p0 = scmp.lt.s32.totalorder %s336_s30, %s336_s30 }
  0x3b   : > { %p1862_p2 = scmp.lt.s32.totalorder %s1853_s17, %s1853_s17 }
  0x3c   : > { %p1856_p12 = pnand %p1854_p11, %p2117_p7 }
  0x3d   : > { %1671 = dma.hbm_to_vmem [thread:$0]  (!%p2107_p6), %s2482_s2, 2048, %s2113_s25, [#allocation7], %s2003_s28, %s2003_s28, %s2004_s29  }
  0x3e   : > { %p1857_p13 = pneg %p1856_p12  ;;  %p1863_p5 = por %p1862_p2, %p1861_p0 }
  0x40   : > { %p1864_p8 = pnand %p1863_p5, %p1857_p13 }
  0x42   : > { %1867 = shalt.err (!%p1864_p8)
}
  0x43   : > { %s2483_s7 = sld [smem:[#allocation23_spill]]  ;;  %s1879_s18 = scalar_lea.vmem %s352_s12, 2048 }
  0x44   : > { %p1880_p9 = scmp.ne.s32.totalorder %s352_s12, %s1879_s18  ;;  %p1887_p12 = scmp.lt.s32.totalorder %s352_s12, %s352_s12 }
  0x45   : > { %p1888_p0 = scmp.lt.s32.totalorder %s1879_s18, %s1879_s18 }
  0x46   : > { %p1882_p10 = pnand %p1880_p9, %p2117_p7 }
  0x47   : > { %p1889_p13 = por %p1888_p0, %p1887_p12 }
  0x48   : > { %p1883_p11 = pneg %p1882_p10 }
  0x49   : > { %1677 = dma.hbm_to_vmem [thread:$0]  (!%p2107_p6), %s2483_s7, 2048, %s336_s30, [#allocation10], %s2003_s28, %s2003_s28, %s2004_s29  }
  0x4a   : > { %p1890_p2 = pnand %p1889_p13, %p1883_p11 }
  0x4c   : > { %1893 = shalt.err (!%p1890_p2)
}
  0x4d   : > { %s2484_s9 = sld [smem:[#allocation24_spill]]  ;;  %s1398_s23 = sadd.s32 4294967294, %s1998_s16  }
  0x4e   : > { %s2183_s26 = sadd.s32 1, %s1998_s16   ;;  %s36_s22 = sadd.s32 1, %s1994_s15 }
  0x4f   : > { %s33_s30 = ssub.s32 %s1998_s16, %s2183_s26  ;;  %p43_p7 = scmp.ne.s32.totalorder %s1994_s15, %s1990_s14 }
  0x50   : > { %p34_p5 = scmp.eq.s32.totalorder %s33_s30, 0  ;;  %p44_p8 = scmp.eq.s32.totalorder %s1998_s16, 0 }
  0x51   : > { %p49_p9 = scmp.ne.s32.totalorder %s1990_s14, %s1986_s13  ;;  %p262_p10 = scmp.eq.s32.totalorder %s2093_s19, 1 }
  0x52   : > { %s2195_s11 = scalar_select %p34_p5, %s1994_s15, %s36_s22  }
  0x53   : > { %1680 = dma.hbm_to_vmem [thread:$0]  (!%p2107_p6), %s2484_s9, 2048, %s352_s12, [#allocation13], %s2003_s28, %s2003_s28, %s2004_s29  }
  0x54   : > { %p45_p11 = por %p44_p8, %p43_p7  ;;  %p2199_p12 = por %p2468_p1, %p49_p9 }
  0x55   : > { %p2203_p6 = por %p262_p10, %p43_p7  ;;  %p268_p0 = scmp.eq.s32.totalorder %s1398_s23, 1 }
  0x56   : > { %s2485_s17 = scalar_select %p2199_p12, 1, 0 }
  0x57   : > { %s2486_s28 = scalar_select %p2203_p6, 1, 0 }
  0x58   : > { %p1694_p13 = scmp.lt.s32.totalorder %s1998_s16, 2  ;;  %s365_s29 = sand.u32 1, %s1994_s15  }
  0x59   : > { %p2209_p2 = por %p268_p0, %p49_p9  ;;  %s1406_s25 = sshll.u32 %s365_s29, 3 }
  0x5a   : > { %s1407_s21 = sshll.u32 %s1998_s16, 7  ;;  %s369_s22 = scalar_lea.vmem [#allocation3], %s1406_s25 }
  0x5b   : > { %s2487_s12 = scalar_select %p2209_p2, 1, 0 }
  0x5c   : > { %s2217_s27 = scalar_lea.hbm %s2457_s0, %s1407_s21  ;;  %s376_s30 = sshll.u32 %s369_s22, 4  ;;  %s377_s30 = int_to_ptr.vmem [resolvable:$true] %s376_s30 }
  0x5d   : > { %p2219_p7 = pnand %p1694_p13, %p45_p11  ;;  %s366_s1 = scalar_lea.sflag [#allocation4], %s365_s29 }
  0x5e   : > { %s1894_s2 = scalar_lea.hbm %s2217_s27, 128  ;;  %s1899_s24 = scalar_lea.hbm %s2457_s0, 256 }
  0x5f   : > { %p1895_p5 = scmp.ne.s32.totalorder %s2217_s27, %s1894_s2  ;;  %p1896_p8 = pneg %p2219_p7 }
  0x60   : > { %p1900_p11 = scmp.lt.s32.totalorder %s2217_s27, %s2457_s0  ;;  %p1901_p0 = scmp.lt.s32.totalorder %s1899_s24, %s1894_s2 }
  0x61   : > { %p1897_p9 = pnand %p1896_p8, %p1895_p5 }
  0x62   : > { %p1902_p13 = por %p1901_p0, %p1900_p11 }
  0x63   : > { %p1898_p10 = pneg %p1897_p9 }
  0x65   : > { %p1903_p4 = pnand %p1902_p13, %p1898_p10 }
  0x67   : > { %1906 = shalt.err (!%p1903_p4)
}
  0x68   : > { %s1907_s22 = scalar_lea.vmem %s377_s30, 128  ;;  %s2007_s29 = smov [#allocation3]  }
  0x69   : > { %p1908_p1 = scmp.ne.s32.totalorder %s377_s30, %s1907_s22  ;;  %s1912_s7 = sshll.u32 %s2007_s29, 4  ;;  %s1913_s7 = int_to_ptr.vmem [resolvable:$false] %s1912_s7 }
  0x6a   : > { %s1914_s9 = scalar_lea.vmem %s1913_s7, 256  ;;  %p1915_p5 = scmp.lt.s32.totalorder %s377_s30, %s1913_s7 }
  0x6b   : > { %p1910_p2 = pnand %p1908_p1, %p1896_p8  ;;  %p1916_p9 = scmp.lt.s32.totalorder %s1914_s9, %s1907_s22 }
  0x6d   : > { %p1911_p6 = pneg %p1910_p2  ;;  %p1917_p12 = por %p1916_p9, %p1915_p5 }
  0x6f   : > { %p1918_p3 = pnand %p1917_p12, %p1911_p6 }
  0x71   : > { %1921 = shalt.err (!%p1918_p3)
}
  0x72   : > { %1684 = dma.hbm_to_vmem [thread:$0]  (!%p2219_p7), %s2217_s27, 128, %s377_s30, %s366_s1  }
  0x73   : > { %p2489_p10 = scmp.ne.s32.totalorder %s2477_s20, 0 }
  0x74   : > { %s2240_s2 = sand.u32 (!%p2489_p10), 1, %s1990_s14   ;;  %p2490_p1 = scmp.ne.s32.totalorder (!%p2489_p10), %s2485_s17, 0 }
  0x75   : > { %385 = sbr.rel (%p2489_p10) target bundleno = 2143 (0x85f), region = 60  ;;  %s1409_s3 = sshll.u32 (!%p2489_p10), %s2240_s2, 3 }
  0x76   : > { %s388_s7 = scalar_lea.sflag (!%p2489_p10), [#allocation4], %s2240_s2  ;;  %s2246_s9 = scalar_lea.vmem (!%p2489_p10), [#allocation3], %s1409_s3 }
  0x7a   : > { %1965 = dma.done.wait (%p2490_p1), %s388_s7, 128  }
  0x7b   : > { %1967 = vsyncadd (%p2490_p1), %s388_s7, 4294967168  ;;  %p2491_p3 = scmp.eq.s32.totalorder %s2093_s19, 0 }
  0x7d   : > { %1969 = dma.done.wait (%p2491_p3), [#allocation7], 4096   ;;  %p2492_p4 = pmov %p2491_p3 }
  0x7e   : > { %p2493_p12 = pmov %p2491_p3 }
  0x7f   : > { %1971 = vsyncadd (%p2492_p4), [#allocation7], 4294963200 }
  0x80   : > { %1973 = dma.done.wait (%p2493_p12), [#allocation10], 4096   ;;  %p2494_p6 = pmov %p2491_p3 }
  0x81   : > { %p2495_p2 = pmov %p2491_p3 }
  0x82   : > { %1975 = vsyncadd (%p2494_p6), [#allocation10], 4294963200 }
  0x83   : > { %1977 = dma.done.wait (%p2495_p2), [#allocation13], 2048   ;;  %p2496_p7 = pmov %p2495_p2 }
  0x84   : > { %v2008_v0 = vmov 0.0   ;;  %vm2009_vm0 = vmmov 0   ;;  %v536_v1 = vld [vmem:[#allocation8 + $0x70] sm:$0xff]  ;;  %v537_v2 = vld [vmem:[#allocation8 + $0x78] sm:$0xff]  ;;  %v534_v6 = vld [vmem:[#allocation8 + $0x60] sm:$0xff]  ;;  %vm668_vm1 = vcmask 64512  }
  0x85   : > { %1979 = vsyncadd (%p2496_p7), [#allocation13], 4294965248  ;;  %1513 = vmatprep.subr.bf16.mxu1 %v2008_v0  ;;  %664 = vst [vmem:[#allocation2] sm:$0xff] %v2008_v0  ;;  %1493 = vmatprep.subr.bf16.mxu0 %v2008_v0  ;;  %v465_v3 = vld [vmem:[#allocation6 + $0x70] sm:$0xff]  ;;  %v545_v4 = vpack.c.bf16 %v537_v2, %v536_v1  ;;  %v466_v5 = vld [vmem:[#allocation6 + $0x78] sm:$0xff]  ;;  %s2010_s30 = smov 120  }
  0x86   : > { %1529 = vmatprep.mubr.msk.bf16.mxu1 %vm2009_vm0, %v2008_v0  ;;  %1509 = vmatprep.mubr.msk.bf16.mxu0 %vm2009_vm0, %v2008_v0  ;;  %v535_v7 = vld [vmem:[#allocation8 + $0x68] sm:$0xff]  ;;  %v474_v8 = vpack.c.bf16 %v466_v5, %v465_v3  ;;  %v463_v9 = vld [vmem:[#allocation6 + $0x60] sm:$0xff]  ;;  %v532_v13 = vld [vmem:[#allocation8 + $0x50] sm:$0xff]  ;;  %s2011_s23 = smov 112   ;;  %s2012_s21 = smov 104   ;;  %vm730_vm2 = vcmask 1043456  }
  0x87   : > { %v464_v10 = vld [vmem:[#allocation6 + $0x68] sm:$0xff]  ;;  %1514 = vmatpush3.bf16.msra.mxu1 %v545_v4  ;;  %v544_v11 = vpack.c.bf16 %v535_v7, %v534_v6  ;;  %v533_v14 = vld [vmem:[#allocation8 + $0x58] sm:$0xff]  ;;  %v461_v15 = vld [vmem:[#allocation6 + $0x50] sm:$0xff]  ;;  %s2013_s25 = smov 8   ;;  %s2014_s22 = smov 16   ;;  %vm892_vm3 = vcmask 130112  }
  0x88   : > { %1494 = vmatpush3.bf16.msra.mxu0 %v474_v8  ;;  %1515 = vmatprep.subr.bf16.mxu1 %v2008_v0  ;;  %v473_v12 = vpack.c.bf16 %v464_v10, %v463_v9  ;;  %v462_v16 = vld [vmem:[#allocation6 + $0x58] sm:$0xff]  ;;  %v543_v17 = vpack.c.bf16 %v533_v14, %v532_v13  ;;  %v530_v19 = vld [vmem:[#allocation8 + $0x40] sm:$0xff]  ;;  %v531_v20 = vld [vmem:[#allocation8 + $0x48] sm:$0xff]  ;;  %s2015_s29 = smov 24   ;;  %vm1008_vm4 = vcmask 195712   ;;  %vm1124_vm5 = vcmask 261312  }
  0x89   : > { %1495 = vmatprep.subr.bf16.mxu0 %v2008_v0  ;;  %v472_v18 = vpack.c.bf16 %v462_v16, %v461_v15  ;;  %v459_v21 = vld [vmem:[#allocation6 + $0x40] sm:$0xff]  ;;  %v460_v22 = vld [vmem:[#allocation6 + $0x48] sm:$0xff]  ;;  %v542_v23 = vpack.c.bf16 %v531_v20, %v530_v19  ;;  %v528_v25 = vld [vmem:[#allocation8 + $0x30] sm:$0xff]  ;;  %s1429_s1 = sshll.u32 %s2093_s19, 7  ;;  %s447_s20 = scalar_lea.vmem [#allocation14], %s1409_s3 }
  0x8a   : > { %v471_v24 = vpack.c.bf16 %v460_v22, %v459_v21  ;;  %v529_v26 = vld [vmem:[#allocation8 + $0x38] sm:$0xff]  ;;  %v457_v27 = vld [vmem:[#allocation6 + $0x30] sm:$0xff]  ;;  %v526_v31 = vld [vmem:[#allocation8 + $0x20] sm:$0xff]  ;;  %s1280_s17 = sshll.u32 %s447_s20, 4  ;;  %p2497_p11 = scmp.ne.s32.totalorder %s2486_s28, 0  ;;  %s2416_s17 = int_to_ptr.vmem [resolvable:$true] %s1280_s17 }
  0x8b   : > { %1516 = vmatpush3.bf16.msra.mxu1 %v544_v11  ;;  %v458_v28 = vld [vmem:[#allocation6 + $0x38] sm:$0xff]  ;;  %v541_v29 = vpack.c.bf16 %v529_v26, %v528_v25  ;;  %v527_v32 = vld [vmem:[#allocation8 + $0x28] sm:$0xff]  ;;  %v455_v33 = vld [vmem:[#allocation6 + $0x20] sm:$0xff]  ;;  %s1922_s19 = scalar_lea.vmem %s2416_s17, 128  ;;  %s2016_s3 = smov [#allocation14]  }
  0x8c   : > { %1496 = vmatpush3.bf16.msra.mxu0 %v473_v12  ;;  %1517 = vmatprep.subr.bf16.mxu1 %v2008_v0  ;;  %v470_v30 = vpack.c.bf16 %v458_v28, %v457_v27  ;;  %v456_v34 = vld [vmem:[#allocation6 + $0x28] sm:$0xff]  ;;  %v540_v35 = vpack.c.bf16 %v527_v32, %v526_v31  ;;  %v524_v37 = vld [vmem:[#allocation8 + $0x10] sm:$0xff]  ;;  %v525_v38 = vld [vmem:[#allocation8 + $0x18] sm:$0xff]  ;;  %p1923_p8 = scmp.ne.s32.totalorder %s2416_s17, %s1922_s19  ;;  %s1926_s18 = sshll.u32 %s2016_s3, 4  ;;  %s1927_s18 = int_to_ptr.vmem [resolvable:$false] %s1926_s18 }
  0x8d   : > { %1497 = vmatprep.subr.bf16.mxu0 %v2008_v0  ;;  %v469_v36 = vpack.c.bf16 %v456_v34, %v455_v33  ;;  %v453_v39 = vld [vmem:[#allocation6 + $0x10] sm:$0xff]  ;;  %v454_v40 = vld [vmem:[#allocation6 + $0x18] sm:$0xff]  ;;  %v539_v41 = vpack.c.bf16 %v525_v38, %v524_v37  ;;  %v522_v43 = vld [vmem:[#allocation8] sm:$0xff]  ;;  %s1928_s24 = scalar_lea.vmem %s1927_s18, 256  ;;  %p1929_p5 = scmp.lt.s32.totalorder %s2416_s17, %s1927_s18 }
  0x8e   : > { %v468_v42 = vpack.c.bf16 %v454_v40, %v453_v39  ;;  %v523_v44 = vld [vmem:[#allocation8 + $0x8] sm:$0xff]  ;;  %v451_v45 = vld [vmem:[#allocation6] sm:$0xff]  ;;  %v2284_v48 = vld [vmem:[%s2246_s9] sm:$0xff]  ;;  %p1924_p0 = pnand %p1923_p8, %p2497_p11  ;;  %p1930_p9 = scmp.lt.s32.totalorder %s1928_s24, %s1922_s19 }
  0x8f   : > { %1518 = vmatpush3.bf16.msra.mxu1 %v543_v17  ;;  %v452_v46 = vld [vmem:[#allocation6 + $0x8] sm:$0xff]  ;;  %v538_v47 = vpack.c.bf16 %v523_v44, %v522_v43  ;;  %v2290_v50 = vpack.c.bf16 %v2284_v48, %v2284_v48  ;;  %v607_v3 = vld [vmem:[#allocation9 + $0x70] sm:$0xff]  ;;  %v608_v4 = vld [vmem:[#allocation9 + $0x78] sm:$0xff] }
  0x90   : > { %1498 = vmatpush3.bf16.msra.mxu0 %v472_v18  ;;  %1519 = vmatprep.subr.bf16.mxu1 %v2008_v0  ;;  %v467_v49 = vpack.c.bf16 %v452_v46, %v451_v45  ;;  %v1417_v51 = vld [vmem:[%s2462_s5] ss:$0 sm:$0xff]  ;;  %v605_v5 = vld [vmem:[#allocation9 + $0x60] sm:$0xff]  ;;  %v616_v6 = vpack.c.bf16 %v608_v4, %v607_v3  ;;  %v603_v9 = vld [vmem:[#allocation9 + $0x50] sm:$0xff]  ;;  %p1925_p13 = pneg %p1924_p0  ;;  %p1931_p10 = por %p1930_p9, %p1929_p5 }
  0x91   : > { %1499 = vmatprep.subr.bf16.mxu0 %v2008_v0  ;;  %v1416_v52 = vld [vmem:[%s2461_s4] ss:$0 sm:$0xff]  ;;  %v604_v10 = vld [vmem:[#allocation9 + $0x58] sm:$0xff]  ;;  %v601_v12 = vld [vmem:[#allocation9 + $0x40] sm:$0xff] }
  0x92   : > { %v606_v7 = vld [vmem:[#allocation9 + $0x68] sm:$0xff]  ;;  %v614_v11 = vpack.c.bf16 %v604_v10, %v603_v9  ;;  %v599_v15 = vld [vmem:[#allocation9 + $0x30] sm:$0xff]  ;;  %v600_v16 = vld [vmem:[#allocation9 + $0x38] sm:$0xff]  ;;  %p1932_p1 = pnand %p1931_p10, %p1925_p13 }
  0x93   : > { %1520 = vmatpush3.bf16.msra.mxu1 %v542_v23  ;;  %v615_v8 = vpack.c.bf16 %v606_v7, %v605_v5  ;;  %v602_v13 = vld [vmem:[#allocation9 + $0x48] sm:$0xff]  ;;  %v612_v17 = vpack.c.bf16 %v600_v16, %v599_v15  ;;  %v597_v18 = vld [vmem:[#allocation9 + $0x20] sm:$0xff]  ;;  %v595_v21 = vld [vmem:[#allocation9 + $0x10] sm:$0xff] }
  0x94   : > { %1500 = vmatpush3.bf16.msra.mxu0 %v471_v24  ;;  %1521 = vmatprep.subr.bf16.mxu1 %v2008_v0  ;;  %v613_v14 = vpack.c.bf16 %v602_v13, %v601_v12  ;;  %v598_v19 = vld [vmem:[#allocation9 + $0x28] sm:$0xff]  ;;  %v596_v22 = vld [vmem:[#allocation9 + $0x18] sm:$0xff]  ;;  %v593_v24 = vld [vmem:[#allocation9] sm:$0xff] }
  0x95   : > { %1501 = vmatprep.subr.bf16.mxu0 %v2008_v0  ;;  %v611_v20 = vpack.c.bf16 %v598_v19, %v597_v18  ;;  %v610_v23 = vpack.c.bf16 %v596_v22, %v595_v21  ;;  %v594_v25 = vld [vmem:[#allocation9 + $0x8] sm:$0xff] }
  0x96   : > { %v609_v26 = vpack.c.bf16 %v594_v25, %v593_v24  ;;  %v1418_v37 = vld [vmem:[%s2463_s6] ss:$0 sm:$0xff] }
  0x97   : > { %1522 = vmatpush3.bf16.msra.mxu1 %v541_v29 }
  0x98   : > { %1502 = vmatpush3.bf16.msra.mxu0 %v470_v30  ;;  %1523 = vmatprep.subr.bf16.mxu1 %v2008_v0 }
  0x99   : > { %1503 = vmatprep.subr.bf16.mxu0 %v2008_v0 }
  0x9b   : > { %1524 = vmatpush3.bf16.msra.mxu1 %v540_v35 }
  0x9c   : > { %1504 = vmatpush3.bf16.msra.mxu0 %v469_v36  ;;  %1525 = vmatprep.subr.bf16.mxu1 %v2008_v0 }
  0x9d   : > { %1505 = vmatprep.subr.bf16.mxu0 %v2008_v0 }
  0x9f   : > { %1526 = vmatpush3.bf16.msra.mxu1 %v539_v41 }
  0xa0   : > { %1506 = vmatpush3.bf16.msra.mxu0 %v468_v42  ;;  %1527 = vmatprep.subr.bf16.mxu1 %v2008_v0 }
  0xa1   : > { %1507 = vmatprep.subr.bf16.mxu0 %v2008_v0 }
  0xa3   : > { %1528 = vmatpush3.bf16.msra.mxu1 %v538_v47 }
  0xa4   : > { %1508 = vmatpush3.bf16.msra.mxu0 %v467_v49  ;;  %1553 = vmatprep.subr.bf16.mxu1 %v2008_v0 }
  0xa5   : > { %1533 = vmatprep.subr.bf16.mxu0 %v2008_v0 }
  0xa6   : > { %1530 = vmatmul.mubr.bf16.vlgmr.msra.gmra.mxu1 %v2290_v50 }
  0xa7   : > { %1510 = vmatmul.mubr.bf16.vlgmr.msra.gmra.mxu0 %v2290_v50  ;;  %1555 = vmatprep.mubr.msk.bf16.mxu1 %vm2009_vm0, %v2008_v0 }
  0xa8   : > { %1549 = vmatprep.mubr.msk.bf16.mxu0 %vm2009_vm0, %v2008_v0  ;;  %1534 = vmatpush3.bf16.msra.mxu0 %v616_v6 }
  0xa9   : > { %1535 = vmatprep.subr.bf16.mxu0 %v2008_v0 }
  0xac   : > { %1536 = vmatpush3.bf16.msra.mxu0 %v615_v8 }
  0xad   : > { %1537 = vmatprep.subr.bf16.mxu0 %v2008_v0 }
  0xb0   : > { %1538 = vmatpush3.bf16.msra.mxu0 %v614_v11 }
  0xb1   : > { %1539 = vmatprep.subr.bf16.mxu0 %v2008_v0 }
  0xb4   : > { %1540 = vmatpush3.bf16.msra.mxu0 %v613_v14 }
  0xb5   : > { %1541 = vmatprep.subr.bf16.mxu0 %v2008_v0 }
  0xb8   : > { %1542 = vmatpush3.bf16.msra.mxu0 %v612_v17 }
  0xb9   : > { %1543 = vmatprep.subr.bf16.mxu0 %v2008_v0 }
  0xbc   : > { %1544 = vmatpush3.bf16.msra.mxu0 %v611_v20 }
  0xbd   : > { %1545 = vmatprep.subr.bf16.mxu0 %v2008_v0 }
  0xc0   : > { %1546 = vmatpush3.bf16.msra.mxu0 %v610_v23 }
  0xc1   : > { %1547 = vmatprep.subr.bf16.mxu0 %v2008_v0 }
  0xc4   : > { %1548 = vmatpush3.bf16.msra.mxu0 %v609_v26 }
  0xc5   : > { %1577 = vmatprep.subr.bf16.mxu0 %v2008_v0 }
  0xc7   : > { %1550 = vmatmul.mubr.bf16.vlgmr.msra.gmra.mxu0 %v2290_v50 }
  0xc8   : > { %1579 = vmatprep.mubr.msk.bf16.mxu0 %vm2009_vm0, %v2008_v0 }
 0x166   : > { %v587_v53 = vpop.f32.mrf.mxu1 }
 0x167   : > { %v588_v54 = vadd.f32 %v1417_v51, %v587_v53  ;;  %v516_v55 = vpop.f32.mrf.mxu0 }
 0x168   : > { %v1531_v56 = vpop.f32.mrf.mxu1  ;;  %v517_v57 = vadd.f32 %v1416_v52, %v516_v55 }
 0x169   : > { %v2306_v58 = vpack.c.bf16 %v588_v54, %v588_v54  ;;  %v1511_v59 = vpop.f32.mrf.mxu0 }
 0x16a   : > { %v590_v60 = vpop.f32.mrf.mxu1  ;;  %v665_v61 = vpack.c.bf16 %v517_v57, %v517_v57 }
 0x16b   : > { %779 = vrot.lane.b32.xlu1 %v2306_v58, %s2010_s30  ;;  %v673_v62 = vsel %vm668_vm1, %v2306_v58, 0  ;;  %v519_v63 = vpop.f32.mrf.mxu0 }
 0x16c   : > { %v1532_v1 = vpop.f32.mrf.mxu1  ;;  %1554 = vmatpush3.bf16.xpose.msra.mxu1 %v673_v62 }
 0x16d   : > { %v1512_v2 = vpop.f32.mrf.mxu0  ;;  %1559 = vmatprep.subr.bf16.mxu1 %v2008_v0 }
 0x16f   : > { %776 = vrot.lane.b32.xlu1 %v665_v61, %s2010_s30 }
 0x173   : > { %894 = vrot.lane.b32.xlu1 %v665_v61, %s2011_s23  ;;  %1556 = vmatmul.mubr.msk.bf16.vlgmr.msra.gmra.mxu1 %vm668_vm1, %v665_v61 }
 0x174   : > { %1561 = vmatprep.mubr.msk.bf16.mxu1 %vm2009_vm0, %v2008_v0 }
 0x177   : > { %1012 = vrot.lane.b32.xlu1 %v2306_v58, %s2012_s21 }
 0x17b   : > { %1010 = vrot.lane.b32.xlu1 %v665_v61, %s2012_s21 }
 0x187   : > { %v658_v38 = vpop.f32.mrf.mxu0 }
 0x188   : > { %v659_v39 = vadd.f32 %v1418_v37, %v658_v38 }
 0x189   : > { %v1551_v40 = vpop.f32.mrf.mxu0 }
 0x18a   : > { %v2337_v41 = vpack.c.bf16 %v659_v39, %v659_v39 }
 0x18b   : > { %v661_v42 = vpop.f32.mrf.mxu0 }
 0x18c   : > { %v732_v44 = vsel %vm730_vm2, %v2337_v41, 0 }
 0x18d   : > { %v1552_v43 = vpop.f32.mrf.mxu0  ;;  %1560 = vmatpush3.bf16.msra.mxu1 %v732_v44 }
 0x18e   : > { %1565 = vmatprep.subr.bf16.mxu1 %v2008_v0 }
 0x1dd   : > { %v780_v45 = vpop.permute.xlu1 %779 }
 0x1de   : > { %v785_v57 = vsel %vm668_vm1, %v780_v45, 0 }
 0x1e1   : > { %v777_v46 = vpop.permute.xlu1 %776 }
 0x1e5   : > { %v895_v49 = vpop.permute.xlu1 %894 }
 0x1e9   : > { %v1013_v52 = vpop.permute.xlu1 %1012 }
 0x1ea   : > { %v1018_v53 = vsel %vm668_vm1, %v1013_v52, 0 }
 0x233   : > { %v709_v27 = vpop.f32.mrf.mxu1 }
 0x234   : > { %v715_v28 = vsel %vm668_vm1, %v709_v27, -inf }
 0x235   : > { %716 = vmax.xlane.f32.xlu0 %v715_v28  ;;  %v1557_v29 = vpop.f32.mrf.mxu1 }
 0x237   : > { %v712_v30 = vpop.f32.mrf.mxu1 }
 0x239   : > { %v1558_v31 = vpop.f32.mrf.mxu1 }
 0x2be   : > { %v717_v32 = vpop.xlane.xlu0 %716 }
 0x2bf   : > { %v718_v33 = vsub.f32 %v709_v27, %v717_v32 }
 0x2c1   : > { %v719_v34 = vmul.f32 1.442695, %v718_v33 }
 0x2c3   : > { %1748 = vpow2.f32 %v719_v34 }
 0x2d0   : > { %v1749_v35 = vpop.eup %1748 }
 0x2d1   : > { %v721_v36 = vsel %vm668_vm1, %v1749_v35, 0.0 }
 0x2d2   : > { %722 = vadd.xlane.f32.xlu0 %v721_v36 }
 0x2e8   : > { %896 = vrot.lane.b32.xlu0 %v2306_v58, %s2011_s23  ;;  %v1011_v58 = vpop.permute.xlu1 %1010 }
 0x35b   : > { %v723_v47 = vpop.xlane.xlu0 %722 }
 0x35c   : > { %1750 = vrcp.f32 %v723_v47 }
 0x35f   : > { %v897_v50 = vpop.permute.xlu0 %896 }
 0x360   : > { %v902_v51 = vsel %vm668_vm1, %v897_v50, 0  ;;  %v1143_v50 = vld [vmem:[#allocation11 + $0x78] sm:$0xff] }
 0x361   : > { %1578 = vmatpush3.bf16.xpose.msra.mxu0 %v902_v51  ;;  %v1140_v51 = vld [vmem:[#allocation11 + $0x60] sm:$0xff] }
 0x362   : > { %1589 = vmatprep.subr.bf16.mxu0 %v2008_v0 }
 0x368   : > { %1580 = vmatmul.mubr.msk.bf16.vlgmr.msra.gmra.mxu0 %vm668_vm1, %v895_v49  ;;  %v1142_v49 = vld [vmem:[#allocation11 + $0x70] sm:$0xff] }
 0x369   : > { %v1751_v54 = vpop.eup %1750  ;;  %1590 = vmatpush3.bf16.xpose.msra.mxu0 %v1018_v53  ;;  %1591 = vmatprep.mubr.msk.bf16.mxu0 %vm2009_vm0, %v2008_v0  ;;  %v1151_v52 = vpack.c.bf16 %v1143_v50, %v1142_v49  ;;  %v1141_v53 = vld [vmem:[#allocation11 + $0x68] sm:$0xff]  ;;  %v1201_v49 = vld [vmem:[#allocation12] sm:$0xff] }
 0x36a   : > { %v725_v55 = vmul.f32 %v1751_v54, %v1749_v35  ;;  %1601 = vmatprep.subr.bf16.mxu0 %v2008_v0  ;;  %v1150_v54 = vpack.c.bf16 %v1141_v53, %v1140_v51  ;;  %v1202_v50 = vld [vmem:[#allocation12 + $0x8] sm:$0xff] }
 0x36b   : > { %v1217_v51 = vpack.c.bf16 %v1202_v50, %v1201_v49 }
 0x36c   : > { %v726_v56 = vpack.c.bf16 %v725_v55, %v725_v55  ;;  %v1138_v55 = vld [vmem:[#allocation11 + $0x50] sm:$0xff] }
 0x36e   : > { %1562 = vmatmul.mubr.msk.bf16.vlgmr.msra.gmra.mxu1 %vm668_vm1, %v726_v56  ;;  %v1139_v56 = vld [vmem:[#allocation11 + $0x58] sm:$0xff] }
 0x36f   : > { %1566 = vmatpush3.bf16.xpose.msra.mxu1 %v785_v57  ;;  %1567 = vmatprep.mubr.msk.bf16.mxu1 %vm2009_vm0, %v2008_v0  ;;  %v1136_v57 = vld [vmem:[#allocation11 + $0x40] sm:$0xff] }
 0x370   : > { %1592 = vmatmul.mubr.msk.bf16.vlgmr.msra.gmra.mxu0 %vm668_vm1, %v1011_v58  ;;  %1571 = vmatprep.subr.bf16.mxu1 %v2008_v0  ;;  %v1149_v58 = vpack.c.bf16 %v1139_v56, %v1138_v55 }
 0x371   : > { %1617 = vmatprep.mubr.msk.bf16.mxu0 %vm2009_vm0, %v2008_v0  ;;  %1602 = vmatpush3.bf16.msra.mxu0 %v1151_v52  ;;  %v1427_v52 = vld [vmem:[%s2465_s8] ss:$0 sm:$0xff] }
 0x372   : > { %1603 = vmatprep.subr.bf16.mxu0 %v2008_v0 }
 0x375   : > { %1604 = vmatpush3.bf16.msra.mxu0 %v1150_v54 }
 0x376   : > { %1568 = vmatmul.mubr.msk.bf16.vlgmr.msra.gmra.mxu1 %vm668_vm1, %v777_v46  ;;  %1605 = vmatprep.subr.bf16.mxu0 %v2008_v0 }
 0x377   : > { %1573 = vmatprep.mubr.msk.bf16.mxu1 %vm2009_vm0, %v2008_v0 }
 0x379   : > { %1606 = vmatpush3.bf16.msra.mxu0 %v1149_v58 }
 0x37a   : > { %1607 = vmatprep.subr.bf16.mxu0 %v2008_v0 }
 0x428   : > { %v938_v59 = vpop.f32.mrf.mxu0 }
 0x429   : > { %v944_v60 = vsel %vm668_vm1, %v938_v59, -inf }
 0x42a   : > { %945 = vmax.xlane.f32.xlu0 %v944_v60  ;;  %v1581_v61 = vpop.f32.mrf.mxu0 }
 0x42b   : > { %v1134_v61 = vld [vmem:[#allocation11 + $0x30] sm:$0xff] }
 0x42c   : > { %v941_v62 = vpop.f32.mrf.mxu0 }
 0x42d   : > { %v1135_v62 = vld [vmem:[#allocation11 + $0x38] sm:$0xff] }
 0x42e   : > { %v768_v63 = vpop.f32.mrf.mxu1  ;;  %v1582_v1 = vpop.f32.mrf.mxu0 }
 0x42f   : > { %774 = vst.msk [vmem:[#allocation2] sm:$0xff] %vm668_vm1, %v768_v63  ;;  %v1132_v63 = vld [vmem:[#allocation11 + $0x20] sm:$0xff]  ;;  %v1147_v1 = vpack.c.bf16 %v1135_v62, %v1134_v61 }
 0x430   : > { %v1563_v2 = vpop.f32.mrf.mxu1  ;;  %v1054_v3 = vpop.f32.mrf.mxu0 }
 0x431   : > { %v1060_v13 = vsel %vm668_vm1, %v1054_v3, -inf  ;;  %v1133_v2 = vld [vmem:[#allocation11 + $0x28] sm:$0xff] }
 0x432   : > { %v771_v4 = vpop.f32.mrf.mxu1  ;;  %v1593_v5 = vpop.f32.mrf.mxu0 }
 0x434   : > { %v1564_v6 = vpop.f32.mrf.mxu1  ;;  %v1057_v7 = vpop.f32.mrf.mxu0 }
 0x435   : > { %v1130_v7 = vld [vmem:[#allocation11 + $0x10] sm:$0xff] }
 0x436   : > { %v821_v8 = vpop.f32.mrf.mxu1  ;;  %v1594_v9 = vpop.f32.mrf.mxu0 }
 0x437   : > { %v827_v10 = vsel %vm668_vm1, %v821_v8, -inf  ;;  %v1128_v9 = vld [vmem:[#allocation11] sm:$0xff] }
 0x438   : > { %828 = vmax.xlane.f32.xlu1 %v827_v10  ;;  %v1569_v11 = vpop.f32.mrf.mxu1 }
 0x439   : > { %v1129_v11 = vld [vmem:[#allocation11 + $0x8] sm:$0xff] }
 0x43a   : > { %v824_v12 = vpop.f32.mrf.mxu1 }
 0x43c   : > { %v1570_v14 = vpop.f32.mrf.mxu1  ;;  %1061 = vmax.xlane.f32.xlu1 %v1060_v13  ;;  %v1144_v13 = vpack.c.bf16 %v1129_v11, %v1128_v9 }
 0x4b3   : > { %v946_v15 = vpop.xlane.xlu0 %945 }
 0x4b4   : > { %v947_v16 = vsub.f32 %v938_v59, %v946_v15  ;;  %v1137_v59 = vld [vmem:[#allocation11 + $0x48] sm:$0xff] }
 0x4b5   : > { %v1148_v60 = vpack.c.bf16 %v1137_v59, %v1136_v57 }
 0x4b6   : > { %v948_v17 = vmul.f32 1.442695, %v947_v16 }
 0x4b7   : > { %1608 = vmatpush3.bf16.msra.mxu0 %v1148_v60 }
 0x4b8   : > { %1752 = vpow2.f32 %v948_v17  ;;  %1609 = vmatprep.subr.bf16.mxu0 %v2008_v0 }
 0x4bb   : > { %1610 = vmatpush3.bf16.msra.mxu0 %v1147_v1 }
 0x4bc   : > { %1611 = vmatprep.subr.bf16.mxu0 %v2008_v0 }
 0x4c1   : > { %v829_v18 = vpop.xlane.xlu1 %828 }
 0x4c2   : > { %v830_v19 = vsub.f32 %v821_v8, %v829_v18  ;;  %v1131_v8 = vld [vmem:[#allocation11 + $0x18] sm:$0xff]  ;;  %v1215_v18 = vld [vmem:[#allocation12 + $0x70] sm:$0xff] }
 0x4c3   : > { %v1145_v10 = vpack.c.bf16 %v1131_v8, %v1130_v7 }
 0x4c4   : > { %v831_v24 = vmul.f32 1.442695, %v830_v19  ;;  %v1216_v19 = vld [vmem:[#allocation12 + $0x78] sm:$0xff] }
 0x4c5   : > { %v1753_v20 = vpop.eup %1752  ;;  %v1062_v21 = vpop.xlane.xlu1 %1061 }
 0x4c6   : > { %v1063_v22 = vsub.f32 %v1054_v3, %v1062_v21  ;;  %v950_v23 = vsel %vm668_vm1, %v1753_v20, 0.0  ;;  %v1146_v3 = vpack.c.bf16 %v1133_v2, %v1132_v63  ;;  %v1224_v21 = vpack.c.bf16 %v1216_v19, %v1215_v18 }
 0x4c7   : > { %951 = vadd.xlane.f32.xlu0 %v950_v23 }
 0x4c8   : > { %v1064_v25 = vmul.f32 1.442695, %v1063_v22  ;;  %1612 = vmatpush3.bf16.msra.mxu0 %v1146_v3  ;;  %v1214_v22 = vld [vmem:[#allocation12 + $0x68] sm:$0xff] }
 0x4c9   : > { %1613 = vmatprep.subr.bf16.mxu0 %v2008_v0 }
 0x4ca   : > { %1754 = vpow2.f32 %v1064_v25 }
 0x4cb   : > { %1756 = vpow2.f32 %v831_v24 }
 0x4cc   : > { %1614 = vmatpush3.bf16.msra.mxu0 %v1145_v10 }
 0x4cd   : > { %1615 = vmatprep.subr.bf16.mxu0 %v2008_v0 }
 0x4d0   : > { %1616 = vmatpush3.bf16.msra.mxu0 %v1144_v13 }
 0x4d7   : > { %v1755_v26 = vpop.eup %1754 }
 0x4d8   : > { %v1066_v27 = vsel %vm668_vm1, %v1755_v26, 0.0  ;;  %v1757_v28 = vpop.eup %1756 }
 0x4d9   : > { %1067 = vadd.xlane.f32.xlu1 %v1066_v27  ;;  %v833_v29 = vsel %vm668_vm1, %v1757_v28, 0.0  ;;  %v1212_v27 = vld [vmem:[#allocation12 + $0x58] sm:$0xff] }
 0x4dd   : > { %840 = vrot.lane.b32.xlu0 %v2337_v41, %s2010_s30  ;;  %834 = vadd.xlane.f32.xlu1 %v833_v29 }
 0x4ee   : > { %956 = vrot.lane.b32.xlu1 %v2337_v41, %s2011_s23  ;;  %s2414_s23 = scalar_lea.hbm %s2467_s10, %s1429_s1 }
 0x4f2   : > { %1072 = vrot.lane.b32.xlu1 %v2337_v41, %s2012_s21  ;;  %s1267_s21 = scalar_lea.sflag [#allocation5], %s2240_s2 }
 0x550   : > { %v952_v30 = vpop.xlane.xlu0 %951 }
 0x554   : > { %v841_v31 = vpop.permute.xlu0 %840 }
 0x555   : > { %v846_v32 = vsel %vm730_vm2, %v841_v31, 0  ;;  %v1209_v31 = vld [vmem:[#allocation12 + $0x40] sm:$0xff] }
 0x556   : > { %1572 = vmatpush3.bf16.msra.mxu1 %v846_v32  ;;  %v1210_v32 = vld [vmem:[#allocation12 + $0x48] sm:$0xff] }
 0x557   : > { %1583 = vmatprep.subr.bf16.mxu1 %v2008_v0 }
 0x562   : > { %v1068_v33 = vpop.xlane.xlu1 %1067 }
 0x566   : > { %v835_v34 = vpop.xlane.xlu1 %834 }
 0x567   : > { %1758 = vrcp.f32 %v835_v34  ;;  %v1207_v34 = vld [vmem:[#allocation12 + $0x30] sm:$0xff] }
 0x568   : > { %1760 = vrcp.f32 %v952_v30 }
 0x569   : > { %1762 = vrcp.f32 %v1068_v33  ;;  %v1221_v33 = vpack.c.bf16 %v1210_v32, %v1209_v31 }
 0x56a   : > { %v957_v37 = vpop.permute.xlu1 %956 }
 0x56b   : > { %v962_v40 = vsel %vm730_vm2, %v957_v37, 0  ;;  %v1205_v37 = vld [vmem:[#allocation12 + $0x20] sm:$0xff] }
 0x56e   : > { %v1073_v42 = vpop.permute.xlu1 %1072 }
 0x56f   : > { %v1078_v45 = vsel %vm730_vm2, %v1073_v42, 0 }
 0x574   : > { %v1759_v35 = vpop.eup %1758 }
 0x575   : > { %v837_v36 = vmul.f32 %v1759_v35, %v1757_v28  ;;  %v1761_v39 = vpop.eup %1760  ;;  %v1208_v35 = vld [vmem:[#allocation12 + $0x38] sm:$0xff] }
 0x576   : > { %v954_v41 = vmul.f32 %v1761_v39, %v1753_v20  ;;  %v1763_v44 = vpop.eup %1762  ;;  %v1213_v20 = vld [vmem:[#allocation12 + $0x60] sm:$0xff] }
 0x577   : > { %v838_v38 = vpack.c.bf16 %v837_v36, %v837_v36  ;;  %v1070_v46 = vmul.f32 %v1763_v44, %v1755_v26  ;;  %v1223_v24 = vpack.c.bf16 %v1214_v22, %v1213_v20  ;;  %v1211_v26 = vld [vmem:[#allocation12 + $0x50] sm:$0xff]  ;;  %v1220_v36 = vpack.c.bf16 %v1208_v35, %v1207_v34 }
 0x578   : > { %v955_v43 = vpack.c.bf16 %v954_v41, %v954_v41  ;;  %v1222_v29 = vpack.c.bf16 %v1212_v27, %v1211_v26 }
 0x579   : > { %1574 = vmatmul.mubr.msk.bf16.vlgmr.msra.gmra.mxu1 %vm668_vm1, %v838_v38  ;;  %v1071_v47 = vpack.c.bf16 %v1070_v46, %v1070_v46  ;;  %v1206_v38 = vld [vmem:[#allocation12 + $0x28] sm:$0xff]  ;;  %v1204_v46 = vld [vmem:[#allocation12 + $0x18] sm:$0xff] }
 0x57a   : > { %1584 = vmatpush3.bf16.msra.mxu1 %v962_v40  ;;  %1585 = vmatprep.mubr.msk.bf16.mxu1 %vm2009_vm0, %v2008_v0  ;;  %v1219_v39 = vpack.c.bf16 %v1206_v38, %v1205_v37 }
 0x57b   : > { %1595 = vmatprep.subr.bf16.mxu1 %v2008_v0 }
 0x581   : > { %1586 = vmatmul.mubr.msk.bf16.vlgmr.msra.gmra.mxu1 %vm668_vm1, %v955_v43 }
 0x582   : > { %1596 = vmatpush3.bf16.msra.mxu1 %v1078_v45  ;;  %1597 = vmatprep.mubr.msk.bf16.mxu1 %vm2009_vm0, %v2008_v0  ;;  %v1203_v45 = vld [vmem:[#allocation12 + $0x10] sm:$0xff] }
 0x583   : > { %1621 = vmatprep.subr.bf16.mxu1 %v2008_v0 }
 0x589   : > { %1598 = vmatmul.mubr.msk.bf16.vlgmr.msra.gmra.mxu1 %vm668_vm1, %v1071_v47  ;;  %v1218_v47 = vpack.c.bf16 %v1204_v46, %v1203_v45 }
 0x58a   : > { %1637 = vmatprep.mubr.msk.bf16.mxu1 %vm2009_vm0, %v2008_v0  ;;  %1622 = vmatpush3.bf16.msra.mxu1 %v1224_v21 }
 0x58b   : > { %1623 = vmatprep.subr.bf16.mxu1 %v2008_v0 }
 0x58e   : > { %1624 = vmatpush3.bf16.msra.mxu1 %v1223_v24 }
 0x58f   : > { %1625 = vmatprep.subr.bf16.mxu1 %v2008_v0 }
 0x592   : > { %1626 = vmatpush3.bf16.msra.mxu1 %v1222_v29 }
 0x593   : > { %1627 = vmatprep.subr.bf16.mxu1 %v2008_v0 }
 0x596   : > { %1628 = vmatpush3.bf16.msra.mxu1 %v1221_v33 }
 0x597   : > { %1629 = vmatprep.subr.bf16.mxu1 %v2008_v0 }
 0x59a   : > { %1630 = vmatpush3.bf16.msra.mxu1 %v1220_v36 }
 0x59b   : > { %1631 = vmatprep.subr.bf16.mxu1 %v2008_v0 }
 0x59e   : > { %1632 = vmatpush3.bf16.msra.mxu1 %v1219_v39 }
 0x59f   : > { %1633 = vmatprep.subr.bf16.mxu1 %v2008_v0 }
 0x5a2   : > { %1634 = vmatpush3.bf16.msra.mxu1 %v1218_v47 }
 0x5a3   : > { %1635 = vmatprep.subr.bf16.mxu1 %v2008_v0 }
 0x5a6   : > { %1636 = vmatpush3.bf16.msra.mxu1 %v1217_v51 }
 0x639   : > { %v882_v4 = vpop.f32.mrf.mxu1 }
 0x63a   : > { %889 = vrot.lane.b32.xlu0 %v882_v4, %s2013_s25 }
 0x63b   : > { %v1575_v5 = vpop.f32.mrf.mxu1 }
 0x63d   : > { %v885_v6 = vpop.f32.mrf.mxu1 }
 0x63f   : > { %v1576_v12 = vpop.f32.mrf.mxu1 }
 0x641   : > { %v998_v14 = vpop.f32.mrf.mxu1 }
 0x642   : > { %1005 = vrot.lane.b32.xlu1 %v998_v14, %s2014_s22 }
 0x643   : > { %v1587_v15 = vpop.f32.mrf.mxu1 }
 0x645   : > { %v1001_v16 = vpop.f32.mrf.mxu1 }
 0x647   : > { %v1588_v17 = vpop.f32.mrf.mxu1 }
 0x649   : > { %v1114_v23 = vpop.f32.mrf.mxu1 }
 0x64a   : > { %1121 = vrot.lane.b32.xlu0 %v1114_v23, %s2015_s29 }
 0x64b   : > { %v1599_v25 = vpop.f32.mrf.mxu1 }
 0x64d   : > { %v1117_v28 = vpop.f32.mrf.mxu1 }
 0x64f   : > { %v1600_v30 = vpop.f32.mrf.mxu1 }
 0x6ac   : > { %v890_v40 = vpop.permute.xlu0 %889 }
 0x6ad   : > { %893 = vst.msk [vmem:[#allocation2] sm:$0xff] %vm892_vm3, %v890_v40 }
 0x6b4   : > { %v1006_v41 = vpop.permute.xlu1 %1005 }
 0x6b5   : > { %1009 = vst.msk [vmem:[#allocation2] sm:$0xff] %vm1008_vm4, %v1006_v41 }
 0x6bc   : > { %v1122_v42 = vpop.permute.xlu0 %1121 }
 0x6bd   : > { %1125 = vst.msk [vmem:[#allocation2] sm:$0xff] %vm1124_vm5, %v1122_v42 }
 0x6c4   : > { %v1126_v43 = vld [vmem:[#allocation2] sm:$0xff] }
 0x6c5   : > { %v1127_v44 = vpack.c.bf16 %v1126_v43, %v1126_v43 }
 0x6c7   : > { %1618 = vmatmul.mubr.bf16.vlgmr.msra.gmra.mxu0 %v1127_v44 }
 0x787   : > { %v1193_v53 = vpop.f32.mrf.mxu0 }
 0x788   : > { %v1194_v54 = vadd.f32 %v1427_v52, %v1193_v53 }
 0x789   : > { %v1619_v55 = vpop.f32.mrf.mxu0 }
 0x78a   : > { %v1199_v56 = vadd.f32 %v1194_v54, %v2284_v48 }
 0x78b   : > { %v1196_v57 = vpop.f32.mrf.mxu0 }
 0x78c   : > { %v1200_v58 = vpack.c.bf16 %v1199_v56, %v1199_v56 }
 0x78d   : > { %v1620_v59 = vpop.f32.mrf.mxu0 }
 0x78e   : > { %1638 = vmatmul.mubr.bf16.vlgmr.msra.gmra.mxu1 %v1200_v58 }
 0x84e   : > { %v1259_v0 = vpop.f32.mrf.mxu1 }
 0x84f   : > { %v1260_v60 = vadd.f32 %v1259_v0, %v1199_v56 }
 0x850   : > { %v1639_v48 = vpop.f32.mrf.mxu1 }
 0x851   : > { %1265 = vst [vmem:[%s447_s20] sm:$0xff] %v1260_v60 }
 0x852   : > { %v1262_v61 = vpop.f32.mrf.mxu1 }
 0x853   : > { %1935 = shalt.err (!%p1932_p1)
}
 0x854   : > { %s1936_s25 = scalar_lea.hbm %s2414_s23, 128  ;;  %s1940_s29 = scalar_lea.hbm %s2467_s10, 256 }
 0x855   : > { %p1937_p3 = scmp.ne.s32.totalorder %s2414_s23, %s1936_s25  ;;  %p1941_p6 = scmp.lt.s32.totalorder %s2414_s23, %s2467_s10 }
 0x856   : > { %p1942_p2 = scmp.lt.s32.totalorder %s1940_s29, %s1936_s25 }
 0x857   : > { %p1938_p4 = pnand %p1937_p3, %p2497_p11 }
 0x858   : > { %p1943_p7 = por %p1942_p2, %p1941_p6 }
 0x859   : > { %p1939_p12 = pneg %p1938_p4 }
 0x85b   : > { %p1944_p8 = pnand %p1943_p7, %p1939_p12 }
 0x85d   : > { %1947 = shalt.err (!%p1944_p8)
}
 0x85e   : > { %1663 = dma.vmem_to_hbm [thread:$0]  (%p2497_p11), %s2416_s17, 128, %s2414_s23, %s1267_s21   ;;  %v1640_v62 = vpop.f32.mrf.mxu1 }
 0x85f PF: > { %s1292_s1 = sand.u32 1, %s1986_s13   ;;  %p2498_p0 = scmp.ne.s32.totalorder %s2487_s12, 0 }
 0x860   : > { %p2499_p13 = scmp.ge.s32.totalorder %s1998_s16, 2  ;;  %s1293_s20 = scalar_lea.sflag [#allocation5], %s1292_s1 }
 0x862   : > { %p1686_p5 = pnand %p2499_p13, %p2498_p0 }
 0x864   : > { %p1687_p9 = pneg %p1686_p5 }
 0x866   : > { %1981 = dma.done.wait (%p1687_p9), %s1293_s20, 128  }
 0x867   : > { %1983 = vsyncadd (%p1687_p9), %s1293_s20, 4294967168  ;;  %p26_p10 = scmp.ge.s32.totalorder %s2183_s26, 4   ;;  %s2500_s13 = smov %s1990_s14 }
 0x868   : > { %s2501_s14 = smov %s1994_s15  ;;  %s2502_s15 = smov %s2195_s11 }
 0x869   : > { %s2503_s16 = smov %s2183_s26  ;;  %28 = sbr.rel (!%p26_p10) target bundleno = 14 (0xe), region = 125 }
 0x86e   :  { %1298 = vsyncpa [#allocation4], 1 }
 0x86f   :  { %1300 = vsyncpa [#allocation4 + $0x1], 1 }
 0x870   :  { %1301 = vsyncpa [#allocation7], 1 }
 0x871   :  { %1302 = vsyncpa [#allocation10], 1 }
 0x872   :  { %1303 = vsyncpa [#allocation13], 1 }
 0x873   :  { %1304 = vsyncpa [#allocation5], 1 }
 0x874   :  { %1306 = vsyncpa [#allocation5 + $0x1], 1 }

</bundles_post_ra>
